<compile_context>
chip_gen: v7x
topology: tpu7x:2x2x1
jax: 0.10.0
libtpu: 0.0.40
codegen_flags: <defaults>
</compile_context>

<pallas_src>
import jax
import jax.numpy as jnp
from jax import lax
from jax.experimental import pallas as pl
from jax.experimental.pallas import tpu as pltpu

HIDDEN = 64   # LSTM hidden / soc_conv channels
EMB = 32      # linear1 / linear2 / conv_3x1 output channels
NEG_SLOPE = 0.1
GRID_H = 13
GRID_W = 3


def _leaky(x):
    return jnp.where(x > 0, x, NEG_SLOPE * x)


# ---------------------------------------------------------------------------
# Kernel A: fused linear1 + LeakyReLU + LSTM (hist ++ nbrs) + linear2 tail
# ---------------------------------------------------------------------------
def lstm_encode_fused(x_flat, T, n_total, n_hist, w1, b1, wih, whh, bl, w2, b2):
    """x_flat: (T*n_total, 2), time-major rows; the first n_hist rows of each time
    step are the history batch, the remaining rows are the neighbours.

    Weight layout (for porting real checkpoints):
      wih = weight_ih_l0.T        -> (32, 256), gate column blocks [i|f|g|o]
      whh = weight_hh_l0.T        -> (64, 256)
      bl  = (b_ih + b_hh)[None]   -> (1, 256)   (biases folded together)
    """
    n_nbrs = n_total - n_hist
    G = 4 * HIDDEN

    def kernel(x_ref, w1_ref, b1_ref, wih_ref, whh_ref, bl_ref, w2_ref, b2_ref,
               hist_ref, nbrs_ref, gx_scr):
        # ---- hoisted out of the recurrence:
        #      one (T*N, 2)@(2, 32) and one (T*N, 32)@(32, 256) matmul
        e = _leaky(jnp.dot(x_ref[...], w1_ref[...],
                           preferred_element_type=jnp.float32) + b1_ref[...])
        gx_scr[...] = jnp.dot(e, wih_ref[...],
                              preferred_element_type=jnp.float32) + bl_ref[...]

        whh_v = whh_ref[...]   # loaded once, outside the serial loop

        def step(t, carry):
            h, c = carry
            start = t * n_total
            if n_total % 8 == 0:
                start = pl.multiple_of(start, 8)
            # single fused-gate matmul per step: (N, 64) @ (64, 256)
            g = gx_scr[pl.ds(start, n_total), :] + jnp.dot(
                h, whh_v, preferred_element_type=jnp.float32)
            i = jax.nn.sigmoid(g[:, 0 * HIDDEN:1 * HIDDEN])
            f = jax.nn.sigmoid(g[:, 1 * HIDDEN:2 * HIDDEN])
            gg = jnp.tanh(g[:, 2 * HIDDEN:3 * HIDDEN])
            o = jax.nn.sigmoid(g[:, 3 * HIDDEN:4 * HIDDEN])
            c = f * c + i * gg
            h = o * jnp.tanh(c)
            return (h, c)

        zeros = jnp.zeros((n_total, HIDDEN), jnp.float32)
        h, _ = lax.fori_loop(0, T, step, (zeros, zeros), unroll=True)

        # tail: linear2 + LeakyReLU on the hist rows, raw h_T for the neighbour rows
        hist_ref[...] = _leaky(
            jnp.dot(h[:n_hist], w2_ref[...],
                    preferred_element_type=jnp.float32) + b2_ref[...])
        nbrs_ref[...] = h[n_hist:]

    return pl.pallas_call(
        kernel,
        out_shape=(jax.ShapeDtypeStruct((n_hist, EMB), jnp.float32),
                   jax.ShapeDtypeStruct((n_nbrs, HIDDEN), jnp.float32)),
        in_specs=[pl.BlockSpec(memory_space=pltpu.MemorySpace.VMEM)] * 8,
        out_specs=(pl.BlockSpec(memory_space=pltpu.MemorySpace.VMEM),
                   pl.BlockSpec(memory_space=pltpu.MemorySpace.VMEM)),
        scratch_shapes=[pltpu.VMEM((T * n_total, G), jnp.float32)],
    )(x_flat, w1, b1, wih, whh, bl, w2, b2)


# ---------------------------------------------------------------------------
# Kernel B: soc_conv (3x3, im2col) + LeakyReLU + conv_3x1 + LeakyReLU + maxpool
#   input  soc: (B, W=3, H=13, C=64)  (mask-native layout, no glue transpose)
#   output    : (B, 5, 32)            (single full-block store)
# ---------------------------------------------------------------------------
def _soc_pool_kernel(x_ref, wsoc_ref, bsoc_ref, w31_ref, b31_ref, o_ref):
    x = x_ref[...]                                               # (B, 3, 13, 64)

    # -- soc_conv: one big contraction, K = 9*64 = 576, instead of 9 K=64 einsums
    p1 = jnp.concatenate(
        [x[:, kw, kh:kh + GRID_H - 2, :] for kh in range(3) for kw in range(3)],
        axis=-1)                                                 # (B, 11, 576)
    a1 = _leaky(jnp.einsum('bhk,kd->bhd', p1, wsoc_ref[...],
                           preferred_element_type=jnp.float32) + bsoc_ref[...])

    # -- conv_3x1: one contraction, K = 3*64 = 192
    p2 = jnp.concatenate([a1[:, kh:kh + GRID_H - 4, :] for kh in range(3)],
                         axis=-1)                                # (B, 9, 192)
    a2 = _leaky(jnp.einsum('bhk,kd->bhd', p2, w31_ref[...],
                           preferred_element_type=jnp.float32) + b31_ref[...])  # (B,9,32)

    # -- MaxPool2d((2,1), stride (2,1), padding (1,0)): 9 -> 5 rows (pad = -inf),
    #    assembled once and written with a single full-block store.
    rows = [a2[:, 0:1, :]]
    for k in range(1, 5):
        rows.append(jnp.maximum(a2[:, 2 * k - 1:2 * k, :], a2[:, 2 * k:2 * k + 1, :]))
    o_ref[...] = jnp.concatenate(rows, axis=1)                   # (B, 5, 32)


def soc_pool(soc, wsoc, bsoc, w31, b31):
    B = soc.shape[0]
    return pl.pallas_call(
        _soc_pool_kernel,
        out_shape=jax.ShapeDtypeStruct((B, 5, EMB), jnp.float32),
        in_specs=[pl.BlockSpec(memory_space=pltpu.MemorySpace.VMEM)] * 5,
        out_specs=pl.BlockSpec(memory_space=pltpu.MemorySpace.VMEM),
    )(soc, wsoc, bsoc, w31, b31)


# ---------------------------------------------------------------------------
# Glue: torch.Tensor.masked_scatter_ equivalent (row-major fill of True slots)
# TODO(synk): if mask occupancy is always per-cell (all 64 channels set together),
# this scatter can be fused into kernel B via SMEM-prefetched cell indices, removing
# one HBM round trip of nbrs_h; kept element-level here to match masked_scatter_.
# ---------------------------------------------------------------------------
def masked_scatter(mask, src):
    flat_mask = mask.reshape(-1)
    src_flat = src.reshape(-1)
    pos = jnp.cumsum(flat_mask.astype(jnp.int32)) - 1
    pos = jnp.clip(pos, 0, src_flat.shape[0] - 1)
    out = jnp.where(flat_mask, src_flat[pos], jnp.zeros((), jnp.float32))
    return out.reshape(mask.shape)


# ---------------------------------------------------------------------------
# Full forward
# ---------------------------------------------------------------------------
def vae_forward(params, hist, nbrs, mask):
    T, B, F = hist.shape
    n_nbrs = nbrs.shape[1]
    n_total = B + n_nbrs

    # single fused LSTM pass over hist ++ nbrs (time-major rows, pre-flattened)
    x_flat = jnp.concatenate([hist, nbrs], axis=1).reshape(T * n_total, F)
    hist_enc, nbrs_h = lstm_encode_fused(
        x_flat, T, n_total, B,
        params['w1'], params['b1'], params['wih'], params['whh'], params['bl'],
        params['w2'], params['b2'])                              # (B,32), (Nn,64)

    # social pooling (mask-native layout: no transpose before the conv kernel)
    soc = masked_scatter(mask, nbrs_h)                           # (B, 3, 13, 64)
    pooled = soc_pool(soc, params['wsoc'], params['bsoc'],
                      params['w31'], params['b31'])              # (B, 5, 32)

    # torch: (B, 32, 5, 1).view(-1, 5*32) -> channel-major flatten (1.3 KB, XLA glue)
    soc_flat = jnp.transpose(pooled, (0, 2, 1)).reshape(B, 5 * EMB)
    return jnp.concatenate([soc_flat, hist_enc], axis=1)         # (B, 192)


if __name__ == "__main__":
    key = jax.random.PRNGKey(0)
    keys = jax.random.split(key, 14)

    def init(k, shape, scale=0.1):
        return (scale * jax.random.normal(k, shape)).astype(jnp.float32)

    # Synthetic parameters in the fused/kernel-friendly layouts.
    #   wih  (32, 256): torch weight_ih_l0.T, gate blocks [i|f|g|o]
    #   whh  (64, 256): torch weight_hh_l0.T
    #   bl   (1, 256) : b_ih + b_hh folded
    #   wsoc (576, 64): torch Conv2d(64,64,3).weight.permute(2,3,1,0).reshape(9*64, 64)
    #   w31  (192, 32): torch Conv2d(64,32,(3,1)).weight[...,0].permute(2,1,0).reshape(192,32)
    params = dict(
        w1=init(keys[0], (2, EMB)),                              # nn.Linear(2, 32)
        b1=init(keys[1], (1, EMB)),
        wih=init(keys[2], (EMB, 4 * HIDDEN)),                    # nn.LSTM(32, 64)
        whh=init(keys[3], (HIDDEN, 4 * HIDDEN)),
        bl=init(keys[4], (1, 4 * HIDDEN)),
        w2=init(keys[5], (HIDDEN, EMB)),                         # nn.Linear(64, 32)
        b2=init(keys[6], (1, EMB)),
        wsoc=init(keys[7], (3, 3, HIDDEN, HIDDEN)).reshape(9 * HIDDEN, HIDDEN),
        bsoc=init(keys[8], (1, HIDDEN)),
        w31=init(keys[9], (3, HIDDEN, EMB)).reshape(3 * HIDDEN, EMB),
        b31=init(keys[10], (1, EMB)),
    )

    T, B, NN = 8, 2, 6
    hist = jax.random.normal(keys[11], (T, B, 2), jnp.float32)
    nbrs = jax.random.normal(keys[12], (T, NN, 2), jnp.float32)

    # mask: (B, 3, 13, 64) bool; each occupied cell has all 64 channels True,
    # total True count == NN * 64 so masked_scatter consumes nbrs_enc exactly.
    mask = jnp.zeros((B, GRID_W, GRID_H, HIDDEN), dtype=bool)
    cells = [(0, 0, 2), (0, 1, 5), (0, 2, 7), (1, 0, 1), (1, 1, 10), (1, 2, 12)]
    for (b, w, h) in cells:
        mask = mask.at[b, w, h, :].set(True)

    fwd = jax.jit(vae_forward)
    enc = fwd(params, hist, nbrs, mask)
    jax.block_until_ready(enc)
    assert enc.shape == (B, 5 * EMB + EMB), enc.shape            # (2, 192)
    print("KERNEL_OK")
</pallas_src>

<mosaic_0001>
module attributes {stable_mosaic.version = 11 : i64} {
  func.func @kernel(%arg0: memref<64x2xf32, #tpu.memory_space<vmem>>, %arg1: memref<2x32xf32, #tpu.memory_space<vmem>>, %arg2: memref<1x32xf32, #tpu.memory_space<vmem>>, %arg3: memref<32x256xf32, #tpu.memory_space<vmem>>, %arg4: memref<64x256xf32, #tpu.memory_space<vmem>>, %arg5: memref<1x256xf32, #tpu.memory_space<vmem>>, %arg6: memref<64x32xf32, #tpu.memory_space<vmem>>, %arg7: memref<1x32xf32, #tpu.memory_space<vmem>>, %arg8: memref<2x32xf32, #tpu.memory_space<vmem>>, %arg9: memref<6x64xf32, #tpu.memory_space<vmem>>, %arg10: memref<64x256xf32, #tpu.memory_space<vmem>>) attributes {dimension_semantics = [], scalar_prefetch = 0 : i64, scratch_operands = 1 : i64, tpu.core_type = #tpu.core_type<tc>} {
    %c0 = arith.constant 0 : index
    %c0_0 = arith.constant 0 : index
    %0 = vector.load %arg0[%c0, %c0_0] : memref<64x2xf32, #tpu.memory_space<vmem>>, vector<64x2xf32>
    %c0_1 = arith.constant 0 : index
    %c0_2 = arith.constant 0 : index
    %1 = vector.load %arg1[%c0_1, %c0_2] : memref<2x32xf32, #tpu.memory_space<vmem>>, vector<2x32xf32>
    %cst = arith.constant dense<0.000000e+00> : vector<64x32xf32>
    %2 = tpu.matmul %0, %1, %cst {dimension_numbers = #tpu.dot_dimension_numbers<[1], [0], [0], [1], [0, 0, 1, 1], [], []>} : vector<64x2xf32>, vector<2x32xf32>, vector<64x32xf32> -> vector<64x32xf32>
    %c0_3 = arith.constant 0 : index
    %c0_4 = arith.constant 0 : index
    %3 = vector.load %arg2[%c0_3, %c0_4] : memref<1x32xf32, #tpu.memory_space<vmem>>, vector<1x32xf32>
    %4 = vector.broadcast %3 : vector<1x32xf32> to vector<64x32xf32>
    %5 = arith.addf %2, %4 : vector<64x32xf32>
    %cst_5 = arith.constant 0.000000e+00 : f32
    %6 = vector.broadcast %cst_5 : f32 to vector<64x32xf32>
    %7 = arith.cmpf ogt, %5, %6 : vector<64x32xf32>
    %cst_6 = arith.constant 1.000000e-01 : f32
    %8 = vector.broadcast %cst_6 : f32 to vector<64x32xf32>
    %9 = arith.mulf %8, %5 : vector<64x32xf32>
    %10 = arith.select %7, %5, %9 : vector<64x32xi1>, vector<64x32xf32>
    %c0_7 = arith.constant 0 : index
    %c0_8 = arith.constant 0 : index
    %11 = vector.load %arg3[%c0_7, %c0_8] : memref<32x256xf32, #tpu.memory_space<vmem>>, vector<32x256xf32>
    %cst_9 = arith.constant dense<0.000000e+00> : vector<64x256xf32>
    %12 = tpu.matmul %10, %11, %cst_9 {dimension_numbers = #tpu.dot_dimension_numbers<[1], [0], [0], [1], [0, 0, 1, 1], [], []>} : vector<64x32xf32>, vector<32x256xf32>, vector<64x256xf32> -> vector<64x256xf32>
    %c0_10 = arith.constant 0 : index
    %c0_11 = arith.constant 0 : index
    %13 = vector.load %arg5[%c0_10, %c0_11] : memref<1x256xf32, #tpu.memory_space<vmem>>, vector<1x256xf32>
    %14 = vector.broadcast %13 : vector<1x256xf32> to vector<64x256xf32>
    %15 = arith.addf %12, %14 : vector<64x256xf32>
    %c0_12 = arith.constant 0 : index
    %c0_13 = arith.constant 0 : index
    %16 = vector.load %arg10[%c0_12, %c0_13] : memref<64x256xf32, #tpu.memory_space<vmem>>, vector<64x256xf32>
    tpu.vector_store %arg10[%c0_12, %c0_13], %15 {strides = array<i32>} : memref<64x256xf32, #tpu.memory_space<vmem>>, vector<64x256xf32>,
    %c0_14 = arith.constant 0 : index
    %c0_15 = arith.constant 0 : index
    %17 = vector.load %arg4[%c0_14, %c0_15] : memref<64x256xf32, #tpu.memory_space<vmem>>, vector<64x256xf32>
    %cst_16 = arith.constant 0.000000e+00 : f32
    %18 = vector.broadcast %cst_16 : f32 to vector<8x64xf32>
    %c0_i32 = arith.constant 0 : i32
    %c8_i32 = arith.constant 8 : i32
    %19 = arith.muli %c0_i32, %c8_i32 : i32
    %20 = tpu.assume_multiple %19, 8 : i32
    %21 = arith.index_cast %20 : i32 to index
    %c0_17 = arith.constant 0 : index
    %22 = vector.load %arg10[%21, %c0_17] : memref<64x256xf32, #tpu.memory_space<vmem>>, vector<8x256xf32>
    %cst_18 = arith.constant dense<0.000000e+00> : vector<8x256xf32>
    %23 = tpu.matmul %18, %17, %cst_18 {dimension_numbers = #tpu.dot_dimension_numbers<[1], [0], [0], [1], [0, 0, 1, 1], [], []>} : vector<8x64xf32>, vector<64x256xf32>, vector<8x256xf32> -> vector<8x256xf32>
    %24 = arith.addf %22, %23 : vector<8x256xf32>
    %25 = vector.extract_strided_slice %24 {offsets = [0, 0], sizes = [8, 64], strides = [1, 1]} : vector<8x256xf32> to vector<8x64xf32>
    %26 = arith.negf %25 : vector<8x64xf32>
    %27 = math.exp %26 : vector<8x64xf32>
    %cst_19 = arith.constant 1.000000e+00 : f32
    %28 = vector.broadcast %cst_19 : f32 to vector<8x64xf32>
    %29 = arith.addf %28, %27 : vector<8x64xf32>
    %30 = arith.divf %28, %29 : vector<8x64xf32>
    %31 = vector.extract_strided_slice %24 {offsets = [0, 64], sizes = [8, 64], strides = [1, 1]} : vector<8x256xf32> to vector<8x64xf32>
    %32 = arith.negf %31 : vector<8x64xf32>
    %33 = math.exp %32 : vector<8x64xf32>
    %cst_20 = arith.constant 1.000000e+00 : f32
    %34 = vector.broadcast %cst_20 : f32 to vector<8x64xf32>
    %35 = arith.addf %34, %33 : vector<8x64xf32>
    %36 = arith.divf %34, %35 : vector<8x64xf32>
    %37 = vector.extract_strided_slice %24 {offsets = [0, 128], sizes = [8, 64], strides = [1, 1]} : vector<8x256xf32> to vector<8x64xf32>
    %38 = math.tanh %37 : vector<8x64xf32>
    %39 = vector.extract_strided_slice %24 {offsets = [0, 192], sizes = [8, 64], strides = [1, 1]} : vector<8x256xf32> to vector<8x64xf32>
    %40 = arith.negf %39 : vector<8x64xf32>
    %41 = math.exp %40 : vector<8x64xf32>
    %cst_21 = arith.constant 1.000000e+00 : f32
    %42 = vector.broadcast %cst_21 : f32 to vector<8x64xf32>
    %43 = arith.addf %42, %41 : vector<8x64xf32>
    %44 = arith.divf %42, %43 : vector<8x64xf32>
    %45 = arith.mulf %36, %18 : vector<8x64xf32>
    %46 = arith.mulf %30, %38 : vector<8x64xf32>
    %47 = arith.addf %45, %46 : vector<8x64xf32>
    %48 = math.tanh %47 : vector<8x64xf32>
    %49 = arith.mulf %44, %48 : vector<8x64xf32>
    %c1_i32 = arith.constant 1 : i32
    %c8_i32_22 = arith.constant 8 : i32
    %50 = arith.muli %c1_i32, %c8_i32_22 : i32
    %51 = tpu.assume_multiple %50, 8 : i32
    %52 = arith.index_cast %51 : i32 to index
    %c0_23 = arith.constant 0 : index
    %53 = vector.load %arg10[%52, %c0_23] : memref<64x256xf32, #tpu.memory_space<vmem>>, vector<8x256xf32>
    %cst_24 = arith.constant dense<0.000000e+00> : vector<8x256xf32>
    %54 = tpu.matmul %49, %17, %cst_24 {dimension_numbers = #tpu.dot_dimension_numbers<[1], [0], [0], [1], [0, 0, 1, 1], [], []>} : vector<8x64xf32>, vector<64x256xf32>, vector<8x256xf32> -> vector<8x256xf32>
    %55 = arith.addf %53, %54 : vector<8x256xf32>
    %56 = vector.extract_strided_slice %55 {offsets = [0, 0], sizes = [8, 64], strides = [1, 1]} : vector<8x256xf32> to vector<8x64xf32>
    %57 = arith.negf %56 : vector<8x64xf32>
    %58 = math.exp %57 : vector<8x64xf32>
    %cst_25 = arith.constant 1.000000e+00 : f32
    %59 = vector.broadcast %cst_25 : f32 to vector<8x64xf32>
    %60 = arith.addf %59, %58 : vector<8x64xf32>
    %61 = arith.divf %59, %60 : vector<8x64xf32>
    %62 = vector.extract_strided_slice %55 {offsets = [0, 64], sizes = [8, 64], strides = [1, 1]} : vector<8x256xf32> to vector<8x64xf32>
    %63 = arith.negf %62 : vector<8x64xf32>
    %64 = math.exp %63 : vector<8x64xf32>
    %cst_26 = arith.constant 1.000000e+00 : f32
    %65 = vector.broadcast %cst_26 : f32 to vector<8x64xf32>
    %66 = arith.addf %65, %64 : vector<8x64xf32>
    %67 = arith.divf %65, %66 : vector<8x64xf32>
    %68 = vector.extract_strided_slice %55 {offsets = [0, 128], sizes = [8, 64], strides = [1, 1]} : vector<8x256xf32> to vector<8x64xf32>
    %69 = math.tanh %68 : vector<8x64xf32>
    %70 = vector.extract_strided_slice %55 {offsets = [0, 192], sizes = [8, 64], strides = [1, 1]} : vector<8x256xf32> to vector<8x64xf32>
    %71 = arith.negf %70 : vector<8x64xf32>
    %72 = math.exp %71 : vector<8x64xf32>
    %cst_27 = arith.constant 1.000000e+00 : f32
    %73 = vector.broadcast %cst_27 : f32 to vector<8x64xf32>
    %74 = arith.addf %73, %72 : vector<8x64xf32>
    %75 = arith.divf %73, %74 : vector<8x64xf32>
    %76 = arith.mulf %67, %47 : vector<8x64xf32>
    %77 = arith.mulf %61, %69 : vector<8x64xf32>
    %78 = arith.addf %76, %77 : vector<8x64xf32>
    %79 = math.tanh %78 : vector<8x64xf32>
    %80 = arith.mulf %75, %79 : vector<8x64xf32>
    %c2_i32 = arith.constant 2 : i32
    %c8_i32_28 = arith.constant 8 : i32
    %81 = arith.muli %c2_i32, %c8_i32_28 : i32
    %82 = tpu.assume_multiple %81, 8 : i32
    %83 = arith.index_cast %82 : i32 to index
    %c0_29 = arith.constant 0 : index
    %84 = vector.load %arg10[%83, %c0_29] : memref<64x256xf32, #tpu.memory_space<vmem>>, vector<8x256xf32>
    %cst_30 = arith.constant dense<0.000000e+00> : vector<8x256xf32>
    %85 = tpu.matmul %80, %17, %cst_30 {dimension_numbers = #tpu.dot_dimension_numbers<[1], [0], [0], [1], [0, 0, 1, 1], [], []>} : vector<8x64xf32>, vector<64x256xf32>, vector<8x256xf32> -> vector<8x256xf32>
    %86 = arith.addf %84, %85 : vector<8x256xf32>
    %87 = vector.extract_strided_slice %86 {offsets = [0, 0], sizes = [8, 64], strides = [1, 1]} : vector<8x256xf32> to vector<8x64xf32>
    %88 = arith.negf %87 : vector<8x64xf32>
    %89 = math.exp %88 : vector<8x64xf32>
    %cst_31 = arith.constant 1.000000e+00 : f32
    %90 = vector.broadcast %cst_31 : f32 to vector<8x64xf32>
    %91 = arith.addf %90, %89 : vector<8x64xf32>
    %92 = arith.divf %90, %91 : vector<8x64xf32>
    %93 = vector.extract_strided_slice %86 {offsets = [0, 64], sizes = [8, 64], strides = [1, 1]} : vector<8x256xf32> to vector<8x64xf32>
    %94 = arith.negf %93 : vector<8x64xf32>
    %95 = math.exp %94 : vector<8x64xf32>
    %cst_32 = arith.constant 1.000000e+00 : f32
    %96 = vector.broadcast %cst_32 : f32 to vector<8x64xf32>
    %97 = arith.addf %96, %95 : vector<8x64xf32>
    %98 = arith.divf %96, %97 : vector<8x64xf32>
    %99 = vector.extract_strided_slice %86 {offsets = [0, 128], sizes = [8, 64], strides = [1, 1]} : vector<8x256xf32> to vector<8x64xf32>
    %100 = math.tanh %99 : vector<8x64xf32>
    %101 = vector.extract_strided_slice %86 {offsets = [0, 192], sizes = [8, 64], strides = [1, 1]} : vector<8x256xf32> to vector<8x64xf32>
    %102 = arith.negf %101 : vector<8x64xf32>
    %103 = math.exp %102 : vector<8x64xf32>
    %cst_33 = arith.constant 1.000000e+00 : f32
    %104 = vector.broadcast %cst_33 : f32 to vector<8x64xf32>
    %105 = arith.addf %104, %103 : vector<8x64xf32>
    %106 = arith.divf %104, %105 : vector<8x64xf32>
    %107 = arith.mulf %98, %78 : vector<8x64xf32>
    %108 = arith.mulf %92, %100 : vector<8x64xf32>
    %109 = arith.addf %107, %108 : vector<8x64xf32>
    %110 = math.tanh %109 : vector<8x64xf32>
    %111 = arith.mulf %106, %110 : vector<8x64xf32>
    %c3_i32 = arith.constant 3 : i32
    %c8_i32_34 = arith.constant 8 : i32
    %112 = arith.muli %c3_i32, %c8_i32_34 : i32
    %113 = tpu.assume_multiple %112, 8 : i32
    %114 = arith.index_cast %113 : i32 to index
    %c0_35 = arith.constant 0 : index
    %115 = vector.load %arg10[%114, %c0_35] : memref<64x256xf32, #tpu.memory_space<vmem>>, vector<8x256xf32>
    %cst_36 = arith.constant dense<0.000000e+00> : vector<8x256xf32>
    %116 = tpu.matmul %111, %17, %cst_36 {dimension_numbers = #tpu.dot_dimension_numbers<[1], [0], [0], [1], [0, 0, 1, 1], [], []>} : vector<8x64xf32>, vector<64x256xf32>, vector<8x256xf32> -> vector<8x256xf32>
    %117 = arith.addf %115, %116 : vector<8x256xf32>
    %118 = vector.extract_strided_slice %117 {offsets = [0, 0], sizes = [8, 64], strides = [1, 1]} : vector<8x256xf32> to vector<8x64xf32>
    %119 = arith.negf %118 : vector<8x64xf32>
    %120 = math.exp %119 : vector<8x64xf32>
    %cst_37 = arith.constant 1.000000e+00 : f32
    %121 = vector.broadcast %cst_37 : f32 to vector<8x64xf32>
    %122 = arith.addf %121, %120 : vector<8x64xf32>
    %123 = arith.divf %121, %122 : vector<8x64xf32>
    %124 = vector.extract_strided_slice %117 {offsets = [0, 64], sizes = [8, 64], strides = [1, 1]} : vector<8x256xf32> to vector<8x64xf32>
    %125 = arith.negf %124 : vector<8x64xf32>
    %126 = math.exp %125 : vector<8x64xf32>
    %cst_38 = arith.constant 1.000000e+00 : f32
    %127 = vector.broadcast %cst_38 : f32 to vector<8x64xf32>
    %128 = arith.addf %127, %126 : vector<8x64xf32>
    %129 = arith.divf %127, %128 : vector<8x64xf32>
    %130 = vector.extract_strided_slice %117 {offsets = [0, 128], sizes = [8, 64], strides = [1, 1]} : vector<8x256xf32> to vector<8x64xf32>
    %131 = math.tanh %130 : vector<8x64xf32>
    %132 = vector.extract_strided_slice %117 {offsets = [0, 192], sizes = [8, 64], strides = [1, 1]} : vector<8x256xf32> to vector<8x64xf32>
    %133 = arith.negf %132 : vector<8x64xf32>
    %134 = math.exp %133 : vector<8x64xf32>
    %cst_39 = arith.constant 1.000000e+00 : f32
    %135 = vector.broadcast %cst_39 : f32 to vector<8x64xf32>
    %136 = arith.addf %135, %134 : vector<8x64xf32>
    %137 = arith.divf %135, %136 : vector<8x64xf32>
    %138 = arith.mulf %129, %109 : vector<8x64xf32>
    %139 = arith.mulf %123, %131 : vector<8x64xf32>
    %140 = arith.addf %138, %139 : vector<8x64xf32>
    %141 = math.tanh %140 : vector<8x64xf32>
    %142 = arith.mulf %137, %141 : vector<8x64xf32>
    %c4_i32 = arith.constant 4 : i32
    %c8_i32_40 = arith.constant 8 : i32
    %143 = arith.muli %c4_i32, %c8_i32_40 : i32
    %144 = tpu.assume_multiple %143, 8 : i32
    %145 = arith.index_cast %144 : i32 to index
    %c0_41 = arith.constant 0 : index
    %146 = vector.load %arg10[%145, %c0_41] : memref<64x256xf32, #tpu.memory_space<vmem>>, vector<8x256xf32>
    %cst_42 = arith.constant dense<0.000000e+00> : vector<8x256xf32>
    %147 = tpu.matmul %142, %17, %cst_42 {dimension_numbers = #tpu.dot_dimension_numbers<[1], [0], [0], [1], [0, 0, 1, 1], [], []>} : vector<8x64xf32>, vector<64x256xf32>, vector<8x256xf32> -> vector<8x256xf32>
    %148 = arith.addf %146, %147 : vector<8x256xf32>
    %149 = vector.extract_strided_slice %148 {offsets = [0, 0], sizes = [8, 64], strides = [1, 1]} : vector<8x256xf32> to vector<8x64xf32>
    %150 = arith.negf %149 : vector<8x64xf32>
    %151 = math.exp %150 : vector<8x64xf32>
    %cst_43 = arith.constant 1.000000e+00 : f32
    %152 = vector.broadcast %cst_43 : f32 to vector<8x64xf32>
    %153 = arith.addf %152, %151 : vector<8x64xf32>
    %154 = arith.divf %152, %153 : vector<8x64xf32>
    %155 = vector.extract_strided_slice %148 {offsets = [0, 64], sizes = [8, 64], strides = [1, 1]} : vector<8x256xf32> to vector<8x64xf32>
    %156 = arith.negf %155 : vector<8x64xf32>
    %157 = math.exp %156 : vector<8x64xf32>
    %cst_44 = arith.constant 1.000000e+00 : f32
    %158 = vector.broadcast %cst_44 : f32 to vector<8x64xf32>
    %159 = arith.addf %158, %157 : vector<8x64xf32>
    %160 = arith.divf %158, %159 : vector<8x64xf32>
    %161 = vector.extract_strided_slice %148 {offsets = [0, 128], sizes = [8, 64], strides = [1, 1]} : vector<8x256xf32> to vector<8x64xf32>
    %162 = math.tanh %161 : vector<8x64xf32>
    %163 = vector.extract_strided_slice %148 {offsets = [0, 192], sizes = [8, 64], strides = [1, 1]} : vector<8x256xf32> to vector<8x64xf32>
    %164 = arith.negf %163 : vector<8x64xf32>
    %165 = math.exp %164 : vector<8x64xf32>
    %cst_45 = arith.constant 1.000000e+00 : f32
    %166 = vector.broadcast %cst_45 : f32 to vector<8x64xf32>
    %167 = arith.addf %166, %165 : vector<8x64xf32>
    %168 = arith.divf %166, %167 : vector<8x64xf32>
    %169 = arith.mulf %160, %140 : vector<8x64xf32>
    %170 = arith.mulf %154, %162 : vector<8x64xf32>
    %171 = arith.addf %169, %170 : vector<8x64xf32>
    %172 = math.tanh %171 : vector<8x64xf32>
    %173 = arith.mulf %168, %172 : vector<8x64xf32>
    %c5_i32 = arith.constant 5 : i32
    %c8_i32_46 = arith.constant 8 : i32
    %174 = arith.muli %c5_i32, %c8_i32_46 : i32
    %175 = tpu.assume_multiple %174, 8 : i32
    %176 = arith.index_cast %175 : i32 to index
    %c0_47 = arith.constant 0 : index
    %177 = vector.load %arg10[%176, %c0_47] : memref<64x256xf32, #tpu.memory_space<vmem>>, vector<8x256xf32>
    %cst_48 = arith.constant dense<0.000000e+00> : vector<8x256xf32>
    %178 = tpu.matmul %173, %17, %cst_48 {dimension_numbers = #tpu.dot_dimension_numbers<[1], [0], [0], [1], [0, 0, 1, 1], [], []>} : vector<8x64xf32>, vector<64x256xf32>, vector<8x256xf32> -> vector<8x256xf32>
    %179 = arith.addf %177, %178 : vector<8x256xf32>
    %180 = vector.extract_strided_slice %179 {offsets = [0, 0], sizes = [8, 64], strides = [1, 1]} : vector<8x256xf32> to vector<8x64xf32>
    %181 = arith.negf %180 : vector<8x64xf32>
    %182 = math.exp %181 : vector<8x64xf32>
    %cst_49 = arith.constant 1.000000e+00 : f32
    %183 = vector.broadcast %cst_49 : f32 to vector<8x64xf32>
    %184 = arith.addf %183, %182 : vector<8x64xf32>
    %185 = arith.divf %183, %184 : vector<8x64xf32>
    %186 = vector.extract_strided_slice %179 {offsets = [0, 64], sizes = [8, 64], strides = [1, 1]} : vector<8x256xf32> to vector<8x64xf32>
    %187 = arith.negf %186 : vector<8x64xf32>
    %188 = math.exp %187 : vector<8x64xf32>
    %cst_50 = arith.constant 1.000000e+00 : f32
    %189 = vector.broadcast %cst_50 : f32 to vector<8x64xf32>
    %190 = arith.addf %189, %188 : vector<8x64xf32>
    %191 = arith.divf %189, %190 : vector<8x64xf32>
    %192 = vector.extract_strided_slice %179 {offsets = [0, 128], sizes = [8, 64], strides = [1, 1]} : vector<8x256xf32> to vector<8x64xf32>
    %193 = math.tanh %192 : vector<8x64xf32>
    %194 = vector.extract_strided_slice %179 {offsets = [0, 192], sizes = [8, 64], strides = [1, 1]} : vector<8x256xf32> to vector<8x64xf32>
    %195 = arith.negf %194 : vector<8x64xf32>
    %196 = math.exp %195 : vector<8x64xf32>
    %cst_51 = arith.constant 1.000000e+00 : f32
    %197 = vector.broadcast %cst_51 : f32 to vector<8x64xf32>
    %198 = arith.addf %197, %196 : vector<8x64xf32>
    %199 = arith.divf %197, %198 : vector<8x64xf32>
    %200 = arith.mulf %191, %171 : vector<8x64xf32>
    %201 = arith.mulf %185, %193 : vector<8x64xf32>
    %202 = arith.addf %200, %201 : vector<8x64xf32>
    %203 = math.tanh %202 : vector<8x64xf32>
    %204 = arith.mulf %199, %203 : vector<8x64xf32>
    %c6_i32 = arith.constant 6 : i32
    %c8_i32_52 = arith.constant 8 : i32
    %205 = arith.muli %c6_i32, %c8_i32_52 : i32
    %206 = tpu.assume_multiple %205, 8 : i32
    %207 = arith.index_cast %206 : i32 to index
    %c0_53 = arith.constant 0 : index
    %208 = vector.load %arg10[%207, %c0_53] : memref<64x256xf32, #tpu.memory_space<vmem>>, vector<8x256xf32>
    %cst_54 = arith.constant dense<0.000000e+00> : vector<8x256xf32>
    %209 = tpu.matmul %204, %17, %cst_54 {dimension_numbers = #tpu.dot_dimension_numbers<[1], [0], [0], [1], [0, 0, 1, 1], [], []>} : vector<8x64xf32>, vector<64x256xf32>, vector<8x256xf32> -> vector<8x256xf32>
    %210 = arith.addf %208, %209 : vector<8x256xf32>
    %211 = vector.extract_strided_slice %210 {offsets = [0, 0], sizes = [8, 64], strides = [1, 1]} : vector<8x256xf32> to vector<8x64xf32>
    %212 = arith.negf %211 : vector<8x64xf32>
    %213 = math.exp %212 : vector<8x64xf32>
    %cst_55 = arith.constant 1.000000e+00 : f32
    %214 = vector.broadcast %cst_55 : f32 to vector<8x64xf32>
    %215 = arith.addf %214, %213 : vector<8x64xf32>
    %216 = arith.divf %214, %215 : vector<8x64xf32>
    %217 = vector.extract_strided_slice %210 {offsets = [0, 64], sizes = [8, 64], strides = [1, 1]} : vector<8x256xf32> to vector<8x64xf32>
    %218 = arith.negf %217 : vector<8x64xf32>
    %219 = math.exp %218 : vector<8x64xf32>
    %cst_56 = arith.constant 1.000000e+00 : f32
    %220 = vector.broadcast %cst_56 : f32 to vector<8x64xf32>
    %221 = arith.addf %220, %219 : vector<8x64xf32>
    %222 = arith.divf %220, %221 : vector<8x64xf32>
    %223 = vector.extract_strided_slice %210 {offsets = [0, 128], sizes = [8, 64], strides = [1, 1]} : vector<8x256xf32> to vector<8x64xf32>
    %224 = math.tanh %223 : vector<8x64xf32>
    %225 = vector.extract_strided_slice %210 {offsets = [0, 192], sizes = [8, 64], strides = [1, 1]} : vector<8x256xf32> to vector<8x64xf32>
    %226 = arith.negf %225 : vector<8x64xf32>
    %227 = math.exp %226 : vector<8x64xf32>
    %cst_57 = arith.constant 1.000000e+00 : f32
    %228 = vector.broadcast %cst_57 : f32 to vector<8x64xf32>
    %229 = arith.addf %228, %227 : vector<8x64xf32>
    %230 = arith.divf %228, %229 : vector<8x64xf32>
    %231 = arith.mulf %222, %202 : vector<8x64xf32>
    %232 = arith.mulf %216, %224 : vector<8x64xf32>
    %233 = arith.addf %231, %232 : vector<8x64xf32>
    %234 = math.tanh %233 : vector<8x64xf32>
    %235 = arith.mulf %230, %234 : vector<8x64xf32>
    %c7_i32 = arith.constant 7 : i32
    %c8_i32_58 = arith.constant 8 : i32
    %236 = arith.muli %c7_i32, %c8_i32_58 : i32
    %237 = tpu.assume_multiple %236, 8 : i32
    %238 = arith.index_cast %237 : i32 to index
    %c0_59 = arith.constant 0 : index
    %239 = vector.load %arg10[%238, %c0_59] : memref<64x256xf32, #tpu.memory_space<vmem>>, vector<8x256xf32>
    %cst_60 = arith.constant dense<0.000000e+00> : vector<8x256xf32>
    %240 = tpu.matmul %235, %17, %cst_60 {dimension_numbers = #tpu.dot_dimension_numbers<[1], [0], [0], [1], [0, 0, 1, 1], [], []>} : vector<8x64xf32>, vector<64x256xf32>, vector<8x256xf32> -> vector<8x256xf32>
    %241 = arith.addf %239, %240 : vector<8x256xf32>
    %242 = vector.extract_strided_slice %241 {offsets = [0, 0], sizes = [8, 64], strides = [1, 1]} : vector<8x256xf32> to vector<8x64xf32>
    %243 = arith.negf %242 : vector<8x64xf32>
    %244 = math.exp %243 : vector<8x64xf32>
    %cst_61 = arith.constant 1.000000e+00 : f32
    %245 = vector.broadcast %cst_61 : f32 to vector<8x64xf32>
    %246 = arith.addf %245, %244 : vector<8x64xf32>
    %247 = arith.divf %245, %246 : vector<8x64xf32>
    %248 = vector.extract_strided_slice %241 {offsets = [0, 64], sizes = [8, 64], strides = [1, 1]} : vector<8x256xf32> to vector<8x64xf32>
    %249 = arith.negf %248 : vector<8x64xf32>
    %250 = math.exp %249 : vector<8x64xf32>
    %cst_62 = arith.constant 1.000000e+00 : f32
    %251 = vector.broadcast %cst_62 : f32 to vector<8x64xf32>
    %252 = arith.addf %251, %250 : vector<8x64xf32>
    %253 = arith.divf %251, %252 : vector<8x64xf32>
    %254 = vector.extract_strided_slice %241 {offsets = [0, 128], sizes = [8, 64], strides = [1, 1]} : vector<8x256xf32> to vector<8x64xf32>
    %255 = math.tanh %254 : vector<8x64xf32>
    %256 = vector.extract_strided_slice %241 {offsets = [0, 192], sizes = [8, 64], strides = [1, 1]} : vector<8x256xf32> to vector<8x64xf32>
    %257 = arith.negf %256 : vector<8x64xf32>
    %258 = math.exp %257 : vector<8x64xf32>
    %cst_63 = arith.constant 1.000000e+00 : f32
    %259 = vector.broadcast %cst_63 : f32 to vector<8x64xf32>
    %260 = arith.addf %259, %258 : vector<8x64xf32>
    %261 = arith.divf %259, %260 : vector<8x64xf32>
    %262 = arith.mulf %253, %233 : vector<8x64xf32>
    %263 = arith.mulf %247, %255 : vector<8x64xf32>
    %264 = arith.addf %262, %263 : vector<8x64xf32>
    %265 = math.tanh %264 : vector<8x64xf32>
    %266 = arith.mulf %261, %265 : vector<8x64xf32>
    %c8_i32_64 = arith.constant 8 : i32
    %267 = vector.extract_strided_slice %266 {offsets = [0, 0], sizes = [2, 64], strides = [1, 1]} : vector<8x64xf32> to vector<2x64xf32>
    %c0_65 = arith.constant 0 : index
    %c0_66 = arith.constant 0 : index
    %268 = vector.load %arg6[%c0_65, %c0_66] : memref<64x32xf32, #tpu.memory_space<vmem>>, vector<64x32xf32>
    %cst_67 = arith.constant dense<0.000000e+00> : vector<2x32xf32>
    %269 = tpu.matmul %267, %268, %cst_67 {dimension_numbers = #tpu.dot_dimension_numbers<[1], [0], [0], [1], [0, 0, 1, 1], [], []>} : vector<2x64xf32>, vector<64x32xf32>, vector<2x32xf32> -> vector<2x32xf32>
    %c0_68 = arith.constant 0 : index
    %c0_69 = arith.constant 0 : index
    %270 = vector.load %arg7[%c0_68, %c0_69] : memref<1x32xf32, #tpu.memory_space<vmem>>, vector<1x32xf32>
    %271 = vector.broadcast %270 : vector<1x32xf32> to vector<2x32xf32>
    %272 = arith.addf %269, %271 : vector<2x32xf32>
    %cst_70 = arith.constant 0.000000e+00 : f32
    %273 = vector.broadcast %cst_70 : f32 to vector<2x32xf32>
    %274 = arith.cmpf ogt, %272, %273 : vector<2x32xf32>
    %cst_71 = arith.constant 1.000000e-01 : f32
    %275 = vector.broadcast %cst_71 : f32 to vector<2x32xf32>
    %276 = arith.mulf %275, %272 : vector<2x32xf32>
    %277 = arith.select %274, %272, %276 : vector<2x32xi1>, vector<2x32xf32>
    %c0_72 = arith.constant 0 : index
    %c0_73 = arith.constant 0 : index
    %278 = vector.load %arg8[%c0_72, %c0_73] : memref<2x32xf32, #tpu.memory_space<vmem>>, vector<2x32xf32>
    tpu.vector_store %arg8[%c0_72, %c0_73], %277 {strides = array<i32>} : memref<2x32xf32, #tpu.memory_space<vmem>>, vector<2x32xf32>,
    %279 = vector.extract_strided_slice %266 {offsets = [2, 0], sizes = [6, 64], strides = [1, 1]} : vector<8x64xf32> to vector<6x64xf32>
    %c0_74 = arith.constant 0 : index
    %c0_75 = arith.constant 0 : index
    %280 = vector.load %arg9[%c0_74, %c0_75] : memref<6x64xf32, #tpu.memory_space<vmem>>, vector<6x64xf32>
    tpu.vector_store %arg9[%c0_74, %c0_75], %279 {strides = array<i32>} : memref<6x64xf32, #tpu.memory_space<vmem>>, vector<6x64xf32>,
    return
  }
}

module attributes {stable_mosaic.version = 11 : i64} {
  func.func @_soc_pool_kernel(%arg0: memref<2x3x13x64xf32, #tpu.memory_space<vmem>>, %arg1: memref<576x64xf32, #tpu.memory_space<vmem>>, %arg2: memref<1x64xf32, #tpu.memory_space<vmem>>, %arg3: memref<192x32xf32, #tpu.memory_space<vmem>>, %arg4: memref<1x32xf32, #tpu.memory_space<vmem>>, %arg5: memref<2x5x32xf32, #tpu.memory_space<vmem>>) attributes {dimension_semantics = [], scalar_prefetch = 0 : i64, scratch_operands = 0 : i64, tpu.core_type = #tpu.core_type<tc>} {
    %c0 = arith.constant 0 : index
    %c0_0 = arith.constant 0 : index
    %c0_1 = arith.constant 0 : index
    %c0_2 = arith.constant 0 : index
    %0 = vector.load %arg0[%c0, %c0_0, %c0_1, %c0_2] : memref<2x3x13x64xf32, #tpu.memory_space<vmem>>, vector<2x3x13x64xf32>
    %1 = vector.extract_strided_slice %0 {offsets = [0, 0, 0, 0], sizes = [2, 1, 11, 64], strides = [1, 1, 1, 1]} : vector<2x3x13x64xf32> to vector<2x1x11x64xf32>
    %2 = vector.shape_cast %1 : vector<2x1x11x64xf32> to vector<2x11x64xf32>
    %3 = vector.extract_strided_slice %0 {offsets = [0, 1, 0, 0], sizes = [2, 1, 11, 64], strides = [1, 1, 1, 1]} : vector<2x3x13x64xf32> to vector<2x1x11x64xf32>
    %4 = vector.shape_cast %3 : vector<2x1x11x64xf32> to vector<2x11x64xf32>
    %5 = vector.extract_strided_slice %0 {offsets = [0, 2, 0, 0], sizes = [2, 1, 11, 64], strides = [1, 1, 1, 1]} : vector<2x3x13x64xf32> to vector<2x1x11x64xf32>
    %6 = vector.shape_cast %5 : vector<2x1x11x64xf32> to vector<2x11x64xf32>
    %7 = vector.extract_strided_slice %0 {offsets = [0, 0, 1, 0], sizes = [2, 1, 11, 64], strides = [1, 1, 1, 1]} : vector<2x3x13x64xf32> to vector<2x1x11x64xf32>
    %8 = vector.shape_cast %7 : vector<2x1x11x64xf32> to vector<2x11x64xf32>
    %9 = vector.extract_strided_slice %0 {offsets = [0, 1, 1, 0], sizes = [2, 1, 11, 64], strides = [1, 1, 1, 1]} : vector<2x3x13x64xf32> to vector<2x1x11x64xf32>
    %10 = vector.shape_cast %9 : vector<2x1x11x64xf32> to vector<2x11x64xf32>
    %11 = vector.extract_strided_slice %0 {offsets = [0, 2, 1, 0], sizes = [2, 1, 11, 64], strides = [1, 1, 1, 1]} : vector<2x3x13x64xf32> to vector<2x1x11x64xf32>
    %12 = vector.shape_cast %11 : vector<2x1x11x64xf32> to vector<2x11x64xf32>
    %13 = vector.extract_strided_slice %0 {offsets = [0, 0, 2, 0], sizes = [2, 1, 11, 64], strides = [1, 1, 1, 1]} : vector<2x3x13x64xf32> to vector<2x1x11x64xf32>
    %14 = vector.shape_cast %13 : vector<2x1x11x64xf32> to vector<2x11x64xf32>
    %15 = vector.extract_strided_slice %0 {offsets = [0, 1, 2, 0], sizes = [2, 1, 11, 64], strides = [1, 1, 1, 1]} : vector<2x3x13x64xf32> to vector<2x1x11x64xf32>
    %16 = vector.shape_cast %15 : vector<2x1x11x64xf32> to vector<2x11x64xf32>
    %17 = vector.extract_strided_slice %0 {offsets = [0, 2, 2, 0], sizes = [2, 1, 11, 64], strides = [1, 1, 1, 1]} : vector<2x3x13x64xf32> to vector<2x1x11x64xf32>
    %18 = vector.shape_cast %17 : vector<2x1x11x64xf32> to vector<2x11x64xf32>
    %19 = tpu.concatenate %2, %4, %6, %8, %10, %12, %14, %16, %18 in 2 : vector<2x11x64xf32>, vector<2x11x64xf32>, vector<2x11x64xf32>, vector<2x11x64xf32>, vector<2x11x64xf32>, vector<2x11x64xf32>, vector<2x11x64xf32>, vector<2x11x64xf32>, vector<2x11x64xf32> -> vector<2x11x576xf32>
    %c0_3 = arith.constant 0 : index
    %c0_4 = arith.constant 0 : index
    %20 = vector.load %arg1[%c0_3, %c0_4] : memref<576x64xf32, #tpu.memory_space<vmem>>, vector<576x64xf32>
    "tpu.trace_start"() <{level = 10 : i32, message = "bhk,kd->bhd"}> : () -> ()
    %cst = arith.constant dense<0.000000e+00> : vector<2x11x64xf32>
    %21 = tpu.matmul %19, %20, %cst {dimension_numbers = #tpu.dot_dimension_numbers<[2], [0], [0, 1], [1], [0, 0, 0, 1, 1, 1], [], []>} : vector<2x11x576xf32>, vector<576x64xf32>, vector<2x11x64xf32> -> vector<2x11x64xf32>
    "tpu.trace_stop"() : () -> ()
    %c0_5 = arith.constant 0 : index
    %c0_6 = arith.constant 0 : index
    %22 = vector.load %arg2[%c0_5, %c0_6] : memref<1x64xf32, #tpu.memory_space<vmem>>, vector<1x64xf32>
    %23 = vector.shape_cast %22 : vector<1x64xf32> to vector<1x1x64xf32>
    %24 = vector.broadcast %23 : vector<1x1x64xf32> to vector<2x11x64xf32>
    %25 = arith.addf %21, %24 : vector<2x11x64xf32>
    %cst_7 = arith.constant 0.000000e+00 : f32
    %26 = vector.broadcast %cst_7 : f32 to vector<2x11x64xf32>
    %27 = arith.cmpf ogt, %25, %26 : vector<2x11x64xf32>
    %cst_8 = arith.constant 1.000000e-01 : f32
    %28 = vector.broadcast %cst_8 : f32 to vector<2x11x64xf32>
    %29 = arith.mulf %28, %25 : vector<2x11x64xf32>
    %30 = arith.select %27, %25, %29 : vector<2x11x64xi1>, vector<2x11x64xf32>
    %31 = vector.extract_strided_slice %30 {offsets = [0, 0, 0], sizes = [2, 9, 64], strides = [1, 1, 1]} : vector<2x11x64xf32> to vector<2x9x64xf32>
    %32 = vector.extract_strided_slice %30 {offsets = [0, 1, 0], sizes = [2, 9, 64], strides = [1, 1, 1]} : vector<2x11x64xf32> to vector<2x9x64xf32>
    %33 = vector.extract_strided_slice %30 {offsets = [0, 2, 0], sizes = [2, 9, 64], strides = [1, 1, 1]} : vector<2x11x64xf32> to vector<2x9x64xf32>
    %34 = tpu.concatenate %31, %32, %33 in 2 : vector<2x9x64xf32>, vector<2x9x64xf32>, vector<2x9x64xf32> -> vector<2x9x192xf32>
    %c0_9 = arith.constant 0 : index
    %c0_10 = arith.constant 0 : index
    %35 = vector.load %arg3[%c0_9, %c0_10] : memref<192x32xf32, #tpu.memory_space<vmem>>, vector<192x32xf32>
    "tpu.trace_start"() <{level = 10 : i32, message = "bhk,kd->bhd"}> : () -> ()
    %cst_11 = arith.constant dense<0.000000e+00> : vector<2x9x32xf32>
    %36 = tpu.matmul %34, %35, %cst_11 {dimension_numbers = #tpu.dot_dimension_numbers<[2], [0], [0, 1], [1], [0, 0, 0, 1, 1, 1], [], []>} : vector<2x9x192xf32>, vector<192x32xf32>, vector<2x9x32xf32> -> vector<2x9x32xf32>
    "tpu.trace_stop"() : () -> ()
    %c0_12 = arith.constant 0 : index
    %c0_13 = arith.constant 0 : index
    %37 = vector.load %arg4[%c0_12, %c0_13] : memref<1x32xf32, #tpu.memory_space<vmem>>, vector<1x32xf32>
    %38 = vector.shape_cast %37 : vector<1x32xf32> to vector<1x1x32xf32>
    %39 = vector.broadcast %38 : vector<1x1x32xf32> to vector<2x9x32xf32>
    %40 = arith.addf %36, %39 : vector<2x9x32xf32>
    %cst_14 = arith.constant 0.000000e+00 : f32
    %41 = vector.broadcast %cst_14 : f32 to vector<2x9x32xf32>
    %42 = arith.cmpf ogt, %40, %41 : vector<2x9x32xf32>
    %cst_15 = arith.constant 1.000000e-01 : f32
    %43 = vector.broadcast %cst_15 : f32 to vector<2x9x32xf32>
    %44 = arith.mulf %43, %40 : vector<2x9x32xf32>
    %45 = arith.select %42, %40, %44 : vector<2x9x32xi1>, vector<2x9x32xf32>
    %46 = vector.extract_strided_slice %45 {offsets = [0, 0, 0], sizes = [2, 1, 32], strides = [1, 1, 1]} : vector<2x9x32xf32> to vector<2x1x32xf32>
    %47 = vector.extract_strided_slice %45 {offsets = [0, 1, 0], sizes = [2, 1, 32], strides = [1, 1, 1]} : vector<2x9x32xf32> to vector<2x1x32xf32>
    %48 = vector.extract_strided_slice %45 {offsets = [0, 2, 0], sizes = [2, 1, 32], strides = [1, 1, 1]} : vector<2x9x32xf32> to vector<2x1x32xf32>
    %49 = arith.maximumf %47, %48 : vector<2x1x32xf32>
    %50 = vector.extract_strided_slice %45 {offsets = [0, 3, 0], sizes = [2, 1, 32], strides = [1, 1, 1]} : vector<2x9x32xf32> to vector<2x1x32xf32>
    %51 = vector.extract_strided_slice %45 {offsets = [0, 4, 0], sizes = [2, 1, 32], strides = [1, 1, 1]} : vector<2x9x32xf32> to vector<2x1x32xf32>
    %52 = arith.maximumf %50, %51 : vector<2x1x32xf32>
    %53 = vector.extract_strided_slice %45 {offsets = [0, 5, 0], sizes = [2, 1, 32], strides = [1, 1, 1]} : vector<2x9x32xf32> to vector<2x1x32xf32>
    %54 = vector.extract_strided_slice %45 {offsets = [0, 6, 0], sizes = [2, 1, 32], strides = [1, 1, 1]} : vector<2x9x32xf32> to vector<2x1x32xf32>
    %55 = arith.maximumf %53, %54 : vector<2x1x32xf32>
    %56 = vector.extract_strided_slice %45 {offsets = [0, 7, 0], sizes = [2, 1, 32], strides = [1, 1, 1]} : vector<2x9x32xf32> to vector<2x1x32xf32>
    %57 = vector.extract_strided_slice %45 {offsets = [0, 8, 0], sizes = [2, 1, 32], strides = [1, 1, 1]} : vector<2x9x32xf32> to vector<2x1x32xf32>
    %58 = arith.maximumf %56, %57 : vector<2x1x32xf32>
    %59 = tpu.concatenate %46, %49, %52, %55, %58 in 1 : vector<2x1x32xf32>, vector<2x1x32xf32>, vector<2x1x32xf32>, vector<2x1x32xf32>, vector<2x1x32xf32> -> vector<2x5x32xf32>
    %c0_16 = arith.constant 0 : index
    %c0_17 = arith.constant 0 : index
    %c0_18 = arith.constant 0 : index
    %60 = vector.load %arg5[%c0_16, %c0_17, %c0_18] : memref<2x5x32xf32, #tpu.memory_space<vmem>>, vector<2x5x32xf32>
    tpu.vector_store %arg5[%c0_16, %c0_17, %c0_18], %59 {strides = array<i32>} : memref<2x5x32xf32, #tpu.memory_space<vmem>>, vector<2x5x32xf32>,
    return
  }
}

</mosaic_0001>

<bundles_post_ra>
// kernel: vae_forward.2
= control target key start
LH: loop header
LB: loop body
LE: loop exit
PB: predicated region body
PF: predicated region fallthrough
CT: control target
= control target key end

     0   :  { %vm72_vm0 = vcmask 1041408   ;;  %vm47_vm1 = vcmask 15360   ;;  %v1721_v21 = vmov 0.0   ;;  %vm225_vm3 = vcmask 261120   ;;  %s2107_s1 = inlined_call_operand.vmem [shape: f32[2,32], index: 1, kind: input, shape index: {}]   ;;  %s2108_s0 = inlined_call_operand.vmem [shape: f32[64,2], index: 0, kind: input, shape index: {}]   ;;  %s2109_s3 = inlined_call_operand.vmem [shape: f32[32,256], index: 3, kind: input, shape index: {}]   ;;  %s2110_s4 = inlined_call_operand.vmem [shape: f32[64,256], index: 4, kind: input, shape index: {}]   ;;  %s2111_s2 = inlined_call_operand.vmem [shape: f32[1,32], index: 2, kind: input, shape index: {}]   ;;  %s2112_s5 = inlined_call_operand.vmem [shape: f32[1,256], index: 5, kind: input, shape index: {}]   ;;  %s2113_s6 = inlined_call_operand.vmem [shape: f32[64,32], index: 6, kind: input, shape index: {}]   ;;  %s2114_s9 = inlined_call_operand.vmem [shape: f32[6,64], index: 9, kind: output, shape index: {1}]   ;;  %s2115_s7 = inlined_call_operand.vmem [shape: f32[1,32], index: 7, kind: input, shape index: {}]   ;;  %s2116_s8 = inlined_call_operand.vmem [shape: f32[2,32], index: 8, kind: output, shape index: {0}]  }
   0x1   :  { %v39_v0 = vld [vmem:[%s2107_s1] sm:$0x3]  ;;  %v32_v2 = vld [vmem:[%s2108_s0 + $0x8] sm:$0xff]  ;;  %v33_v3 = vld [vmem:[%s2108_s0 + $0x10] sm:$0xff]  ;;  %678 = vmatprep.mubr.f32.mxu1 %v1721_v21  ;;  %vm400_vm11 = vcmask 523264   ;;  %vm1724_vm12 = vmmov 0  }
   0x2   :  { %v31_v1 = vld [vmem:[%s2108_s0] sm:$0xff]  ;;  %1408 = vmatprep.subr.msk.mxu0 %vm72_vm0, %v39_v0  ;;  %v34_v4 = vld [vmem:[%s2108_s0 + $0x18] sm:$0xff]  ;;  %v206_v5 = vld [vmem:[%s2109_s3 + $0x8] sm:$0xff]  ;;  %vm1330_vm13 = vcmask 523266   ;;  %vm1327_vm15 = vcmask 254976  }
   0x3   :  { %1410 = vmatprep.mubr.msk.f32.mxu0 %vm47_vm1, %v31_v1  ;;  %1409 = vmatpush3.msk.msra.mxu0 %vm72_vm0, %v39_v0  ;;  %v208_v6 = vld [vmem:[%s2109_s3 + $0x18] sm:$0xff]  ;;  %v205_v7 = vld [vmem:[%s2109_s3] sm:$0xff]  ;;  %v207_v9 = vld [vmem:[%s2109_s3 + $0x10] sm:$0xff] }
   0x4   :  { %1411 = vmatmul.mubr.msk.f32.vlgmr.msra.gmra.mrb[0].mxu0 %vm47_vm1, %v32_v2  ;;  %v1441_v8 = vpack.c.bf16 %v208_v6, %v206_v5  ;;  %v210_v10 = vld [vmem:[%s2109_s3 + $0x28] sm:$0xff]  ;;  %v212_v11 = vld [vmem:[%s2109_s3 + $0x38] sm:$0xff]  ;;  %v35_v12 = vld [vmem:[%s2108_s0 + $0x20] sm:$0xff]  ;;  %v1443_v13 = vpack.c.bf16 %v207_v9, %v205_v7 }
   0x5   :  { %1413 = vmatprep.mubr.msk.f32.mxu0 %vm47_vm1, %v33_v3  ;;  %v1445_v14 = vpack.c.bf16 %v212_v11, %v210_v10  ;;  %v209_v15 = vld [vmem:[%s2109_s3 + $0x20] sm:$0xff]  ;;  %v211_v16 = vld [vmem:[%s2109_s3 + $0x30] sm:$0xff]  ;;  %v36_v17 = vld [vmem:[%s2108_s0 + $0x28] sm:$0xff] }
   0x6   :  { %1442 = vmatprep.subr.bf16.mxu0 %v1441_v8  ;;  %v1447_v18 = vpack.c.bf16 %v211_v16, %v209_v15  ;;  %v37_v19 = vld [vmem:[%s2108_s0 + $0x30] sm:$0xff]  ;;  %v38_v20 = vld [vmem:[%s2108_s0 + $0x38] sm:$0xff]  ;;  %v380_v22 = vld [vmem:[%s2110_s4 + $0x8] sm:$0xff] }
   0x7   :  { %1444 = vmatpush1.bf16.msra.mxu0 %v1443_v13  ;;  %v382_v23 = vld [vmem:[%s2110_s4 + $0x18] sm:$0xff]  ;;  %v379_v24 = vld [vmem:[%s2110_s4] sm:$0xff]  ;;  %v381_v26 = vld [vmem:[%s2110_s4 + $0x10] sm:$0xff] }
   0x8   :  { %1414 = vmatmul.mubr.msk.f32.gmra.mrb[2].mxu0 %vm47_vm1, %v34_v4  ;;  %1446 = vmatprep.subr.bf16.mxu0 %v1445_v14  ;;  %v1845_v25 = vpack.c.bf16 %v382_v23, %v380_v22  ;;  %v1850_v27 = vpack.c.bf16 %v381_v26, %v379_v24  ;;  %v384_v28 = vld [vmem:[%s2110_s4 + $0x28] sm:$0xff]  ;;  %v386_v29 = vld [vmem:[%s2110_s4 + $0x38] sm:$0xff]  ;;  %v383_v31 = vld [vmem:[%s2110_s4 + $0x20] sm:$0xff]  ;;  %v215_v22 = vlaneseq }
   0x9   :  { %1416 = vmatprep.mubr.msk.f32.mxu0 %vm47_vm1, %v35_v12  ;;  %v1860_v30 = vpack.c.bf16 %v386_v29, %v384_v28  ;;  %v385_v32 = vld [vmem:[%s2110_s4 + $0x30] sm:$0xff]  ;;  %v388_v34 = vld [vmem:[%s2110_s4 + $0x48] sm:$0xff]  ;;  %v390_v35 = vld [vmem:[%s2110_s4 + $0x58] sm:$0xff] }
   0xa   :  { %1482 = vmatprep.subr.bf16.mxu1 %v1845_v25  ;;  %v1870_v33 = vpack.c.bf16 %v385_v32, %v383_v31  ;;  %v1879_v36 = vpack.c.bf16 %v390_v35, %v388_v34  ;;  %v387_v37 = vld [vmem:[%s2110_s4 + $0x40] sm:$0xff]  ;;  %v389_v38 = vld [vmem:[%s2110_s4 + $0x50] sm:$0xff]  ;;  %v392_v40 = vld [vmem:[%s2110_s4 + $0x68] sm:$0xff]  ;;  %v216_v26 = vshrl.u32 %v215_v22, 7 }
   0xb   :  { %1448 = vmatpush1.bf16.msra.mxu0 %v1447_v18  ;;  %1484 = vmatpush1.bf16.msra.mxu1 %v1850_v27  ;;  %v1888_v39 = vpack.c.bf16 %v389_v38, %v387_v37  ;;  %v394_v41 = vld [vmem:[%s2110_s4 + $0x78] sm:$0xff]  ;;  %v391_v43 = vld [vmem:[%s2110_s4 + $0x60] sm:$0xff]  ;;  %v393_v44 = vld [vmem:[%s2110_s4 + $0x70] sm:$0xff] }
   0xc   :  { %1417 = vmatmul.mubr.msk.f32.gmra.mrb[4].mxu0 %vm47_vm1, %v36_v17  ;;  %1450 = vmatprep.subr.bf16.mxu0 %v1845_v25  ;;  %v1897_v42 = vpack.c.bf16 %v394_v41, %v392_v40  ;;  %v1906_v45 = vpack.c.bf16 %v393_v44, %v391_v43  ;;  %v1347_v46 = vld [vmem:[%s2111_s2] ss:$0 sm:$0xff]  ;;  %v217_v31 = vsub.s32 0, %v216_v26  ;;  %v221_v44 = vsub.s32 1, %v216_v26 }
   0xd   :  { %1419 = vmatprep.mubr.msk.f32.mxu0 %vm47_vm1, %v37_v19  ;;  %1486 = vmatprep.subr.bf16.mxu1 %v1860_v30  ;;  %v213_v32 = vld [vmem:[%s2112_s5] sm:$0x3]  ;;  %s1722_s5 = smov 64  }
   0xe   :  { %v1973_v37 = vrot.slane %v213_v32, %v217_v31 }
   0xf   :  { %1488 = vmatpush1.bf16.msra.mxu1 %v1870_v33 }
  0x10   :  { %1420 = vmatmul.mubr.msk.f32.gmra.mrb[6].mxu0 %vm47_vm1, %v38_v20  ;;  %1490 = vmatprep.subr.bf16.mxu1 %v1879_v36 }
  0x11   :  { %314 = vmatprep.mubr.f32.mxu0 %v1721_v21 }
  0x13   :  { %1492 = vmatpush1.bf16.msra.mxu1 %v1888_v39 }
  0x14   :  { %1494 = vmatprep.subr.bf16.mxu1 %v1897_v42 }
  0x17   :  { %1496 = vmatpush1.bf16.msra.mxu1 %v1906_v45 }
  0x18   :  { %1498 = vmatprep.subr.bf16.mxu1 %v1845_v25 }
  0xd7   :  { %v1412_v47 = vpop.f32.mrb[0].mxu0 }
  0xd8   :  { %v142_v48 = vpop.f32.mrb[1].mxu0  ;;  %v148_v49 = vadd.f32 %v1412_v47, %v1347_v46 }
  0xd9   :  { %v143_v50 = vadd.f32 %v1347_v46, %v142_v48 }
  0xda   :  { %v190_v54 = vmul.f32 0.1, %v148_v49  ;;  %vm182_vm4 = vcmp.gt.f32.partialorder %v148_v49, 0.0 }
  0xdb   :  { %vm181_vm2 = vcmp.gt.f32.partialorder %v143_v50, 0.0  ;;  %v189_v51 = vmul.f32 0.1, %v143_v50  ;;  %v1415_v52 = vpop.f32.mrb[2].mxu0 }
  0xdc   :  { %v152_v53 = vpop.f32.mrb[3].mxu0  ;;  %v158_v59 = vadd.f32 %v1415_v52, %v1347_v46  ;;  %v198_v61 = vsel %vm182_vm4, %v148_v49, %v190_v54 }
  0xdd   :  { %v197_v55 = vsel %vm181_vm2, %v143_v50, %v189_v51  ;;  %v153_v56 = vadd.f32 %v1347_v46, %v152_v53 }
  0xde   :  { %1357 = vmatmul.mubr.msk.f32.vlgmr.msra.gmra.mrb[8].mxu0 %vm225_vm3, %v197_v55  ;;  %v192_v0 = vmul.f32 0.1, %v158_v59  ;;  %vm184_vm6 = vcmp.gt.f32.partialorder %v158_v59, 0.0 }
  0xdf   :  { %1452 = vmatpush1.bf16.msra.mxu0 %v1850_v27  ;;  %320 = vmatprep.mubr.f32.mxu0 %v1721_v21  ;;  %v1418_v57 = vpop.f32.mrb[4].mxu0  ;;  %v191_v60 = vmul.f32 0.1, %v153_v56  ;;  %vm183_vm5 = vcmp.gt.f32.partialorder %v153_v56, 0.0 }
  0xe0   :  { %v162_v58 = vpop.f32.mrb[5].mxu0  ;;  %1454 = vmatprep.subr.bf16.mxu0 %v1860_v30  ;;  %v168_v3 = vadd.f32 %v1418_v57, %v1347_v46  ;;  %v200_v5 = vsel %vm184_vm6, %v158_v59, %v192_v0 }
  0xe1   :  { %v163_v1 = vadd.f32 %v1347_v46, %v162_v58  ;;  %v199_v2 = vsel %vm183_vm5, %v153_v56, %v191_v60 }
  0xe2   :  { %1358 = vmatmul.mubr.msk.f32.gmra.mrb[10].mxu0 %vm225_vm3, %v198_v61  ;;  %v194_v6 = vmul.f32 0.1, %v168_v3  ;;  %vm186_vm8 = vcmp.gt.f32.partialorder %v168_v3, 0.0 }
  0xe3   :  { %326 = vmatprep.mubr.f32.mxu0 %v1721_v21  ;;  %1456 = vmatpush1.bf16.msra.mxu0 %v1870_v33  ;;  %v1421_v62 = vpop.f32.mrb[6].mxu0  ;;  %v193_v4 = vmul.f32 0.1, %v163_v1  ;;  %vm185_vm7 = vcmp.gt.f32.partialorder %v163_v1, 0.0 }
  0xe4   :  { %v172_v63 = vpop.f32.mrb[7].mxu0  ;;  %1458 = vmatprep.subr.bf16.mxu0 %v1879_v36  ;;  %v178_v9 = vadd.f32 %v1421_v62, %v1347_v46  ;;  %v202_v11 = vsel %vm186_vm8, %v168_v3, %v194_v6 }
  0xe5   :  { %v173_v7 = vadd.f32 %v1347_v46, %v172_v63  ;;  %v201_v8 = vsel %vm185_vm7, %v163_v1, %v193_v4  ;;  %v1976_v46 = vrot.slane %v213_v32, %v221_v44 }
  0xe6   :  { %1359 = vmatmul.mubr.msk.f32.gmra.mrb[12].mxu0 %vm225_vm3, %v199_v2  ;;  %v196_v12 = vmul.f32 0.1, %v178_v9  ;;  %vm188_vm10 = vcmp.gt.f32.partialorder %v178_v9, 0.0 }
  0xe7   :  { %332 = vmatprep.mubr.f32.mxu0 %v1721_v21  ;;  %1460 = vmatpush1.bf16.msra.mxu0 %v1888_v39  ;;  %v195_v10 = vmul.f32 0.1, %v173_v7  ;;  %vm187_vm9 = vcmp.gt.f32.partialorder %v173_v7, 0.0 }
  0xe8   :  { %1462 = vmatprep.subr.bf16.mxu0 %v1897_v42  ;;  %v204_v14 = vsel %vm188_vm10, %v178_v9, %v196_v12 }
  0xe9   :  { %v203_v13 = vsel %vm187_vm9, %v173_v7, %v195_v10 }
  0xea   :  { %1360 = vmatmul.mubr.msk.f32.gmra.mrb[14].mxu0 %vm225_vm3, %v200_v5 }
  0xeb   :  { %338 = vmatprep.mubr.f32.mxu0 %v1721_v21  ;;  %1464 = vmatpush1.bf16.msra.mxu0 %v1906_v45 }
  0xec   :  { %1466 = vmatprep.subr.bf16.mxu0 %v1845_v25 }
  0xee   :  { %1361 = vmatmul.mubr.msk.f32.gmra.mrb[16].mxu0 %vm225_vm3, %v201_v8 }
  0xef   :  { %344 = vmatprep.mubr.f32.mxu0 %v1721_v21 }
  0xf2   :  { %1362 = vmatmul.mubr.msk.f32.gmra.mrb[18].mxu0 %vm225_vm3, %v202_v11 }
  0xf3   :  { %350 = vmatprep.mubr.f32.mxu0 %v1721_v21 }
  0xf6   :  { %1363 = vmatmul.mubr.msk.f32.gmra.mrb[20].mxu0 %vm225_vm3, %v203_v13 }
  0xf7   :  { %356 = vmatprep.mubr.f32.mxu0 %v1721_v21 }
  0xfa   :  { %1364 = vmatmul.mubr.msk.f32.gmra.mrb[22].mxu0 %vm225_vm3, %v204_v14 }
  0xfb   :  { %468 = vmatprep.mubr.f32.mxu0 %v1721_v21 }
  0xfe   :  { %469 = vmatmul.mubr.f32.vlgmr.msra.gmra.mrb[8].mxu0 %v1721_v21 }
  0xff   :  { %1468 = vmatpush1.bf16.msra.mxu0 %v1850_v27  ;;  %573 = vmatprep.mubr.f32.mxu0 %v1721_v21 }
 0x100   :  { %1470 = vmatprep.subr.bf16.mxu0 %v1860_v30 }
 0x103   :  { %1472 = vmatpush1.bf16.msra.mxu0 %v1870_v33 }
 0x104   :  { %1474 = vmatprep.subr.bf16.mxu0 %v1879_v36 }
 0x107   :  { %1476 = vmatpush1.bf16.msra.mxu0 %v1888_v39 }
 0x108   :  { %1478 = vmatprep.subr.bf16.mxu0 %v1897_v42 }
 0x10b   :  { %1480 = vmatpush1.bf16.msra.mxu0 %v1906_v45 }
 0x1b9   :  { %v1946_v15 = vpop.f32.mrb[12].mxu0 }
 0x1ba   :  { %v1948_v16 = vpop.f32.mrb[13].mxu0 }
 0x1bd   :  { %v1950_v17 = vpop.f32.mrb[14].mxu0 }
 0x1be   :  { %v1952_v18 = vpop.f32.mrb[15].mxu0 }
 0x1c1   :  { %v1954_v19 = vpop.f32.mrb[16].mxu0 }
 0x1c2   :  { %v1956_v20 = vpop.f32.mrb[17].mxu0 }
 0x1c5   :  { %v1958_v23 = vpop.f32.mrb[18].mxu0 }
 0x1c6   :  { %v1960_v24 = vpop.f32.mrb[19].mxu0 }
 0x1c9   :  { %v1962_v28 = vpop.f32.mrb[20].mxu0 }
 0x1ca   :  { %v1964_v29 = vpop.f32.mrb[21].mxu0 }
 0x1cd   :  { %v1969_v34 = vpop.f32.mrb[22].mxu0 }
 0x1ce   :  { %v1971_v35 = vpop.f32.mrb[23].mxu0 }
 0x1d1   :  { %v470_v38 = vpop.f32.mrb[8].mxu0 }
 0x1d2   :  { %v1589_v40 = vadd.f32 %v470_v38, %v1973_v37  ;;  %v472_v41 = vpop.f32.mrb[9].mxu0  ;;  %v329_v38 = vadd.f32 %v1946_v15, %v1973_v37 }
 0x1d3   :  { %v1590_v47 = vadd.f32 %v472_v41, %v1976_v46 }
 0x1d4   :  { %v1365_v43 = vmul.f32 -1.442695, %v1589_v40  ;;  %v331_v40 = vadd.f32 %v1948_v16, %v1976_v46 }
 0x1d5   :  { %v1366_v53 = vmul.f32 -1.442695, %v1590_v47 }
 0x1d6   :  { %1625 = vpow2.f32 %v1365_v43 }
 0x1d7   :  { %1627 = vtanh.f32 %v1590_v47 }
 0x1e0   :  { %v1626_v48 = vpop.eup %1625 }
 0x1e1   :  { %v480_v49 = vadd.f32 1.0, %v1626_v48  ;;  %v1628_v50 = vpop.eup %1627 }
 0x1e3   :  { %1629 = vrcp.f32 %v480_v49 }
 0x1e4   :  { %1631 = vpow2.f32 %v1366_v53 }
 0x1ed   :  { %v1630_v51 = vpop.eup %1629 }
 0x1ee   :  { %v491_v52 = vmul.f32 %v1630_v51, %v1628_v50  ;;  %v1632_v54 = vpop.eup %1631  ;;  %v490_v56 = vmul.f32 0.0, %v1630_v51 }
 0x1ef   :  { %v487_v55 = vadd.f32 1.0, %v1632_v54 }
 0x1f0   :  { %493 = vrot.lane.b32.xlu0 %v491_v52, %s1722_s5 }
 0x1f1   :  { %1633 = vrcp.f32 %v487_v55 }
 0x1fb   :  { %v1634_v59 = vpop.eup %1633 }
 0x262   :  { %v494_v57 = vpop.permute.xlu0 %493 }
 0x263   :  { %v496_v58 = vadd.f32 %v494_v57, %v490_v56 }
 0x265   :  { %1635 = vtanh.f32 %v496_v58 }
 0x26f   :  { %v1636_v60 = vpop.eup %1635 }
 0x270   :  { %v498_v61 = vmul.f32 %v1636_v60, %v1634_v59 }
 0x272   :  { %505 = vrot.lane.b32.xlu0 %v498_v61, %s1722_s5 }
 0x2e4   :  { %v506_v62 = vpop.permute.xlu0 %505 }
 0x2e5   :  { %1367 = vmatmul.mubr.msk.f32.vlgmr.msra.gmra.mrb[10].mxu0 %vm400_vm11, %v506_v62  ;;  %v335_v62 = vadd.f32 %v1950_v17, %v1973_v37 }
 0x2e6   :  { %1438 = vmatprep.mubr.msk.f32.mxu0 %vm1724_vm12, %v1721_v21 }
 0x3b8   :  { %v575_v63 = vpop.f32.mrb[10].mxu0 }
 0x3b9   :  { %v1591_v0 = vadd.f32 %v575_v63, %v1973_v37  ;;  %v577_v1 = vpop.f32.mrb[11].mxu0  ;;  %v337_v63 = vadd.f32 %v1952_v18, %v1976_v46 }
 0x3ba   :  { %v1592_v3 = vadd.f32 %v577_v1, %v1976_v46 }
 0x3bb   :  { %v1368_v2 = vmul.f32 -1.442695, %v1591_v0 }
 0x3bc   :  { %v1369_v9 = vmul.f32 -1.442695, %v1592_v3 }
 0x3bd   :  { %1637 = vpow2.f32 %v1368_v2 }
 0x3be   :  { %1639 = vtanh.f32 %v1592_v3 }
 0x3c7   :  { %v1638_v4 = vpop.eup %1637 }
 0x3c8   :  { %v585_v5 = vadd.f32 1.0, %v1638_v4  ;;  %v1640_v6 = vpop.eup %1639 }
 0x3ca   :  { %1641 = vrcp.f32 %v585_v5 }
 0x3cb   :  { %1643 = vpow2.f32 %v1369_v9 }
 0x3d4   :  { %v1642_v7 = vpop.eup %1641 }
 0x3d5   :  { %v596_v8 = vmul.f32 %v1642_v7, %v1640_v6  ;;  %v1644_v10 = vpop.eup %1643  ;;  %v595_v12 = vmul.f32 %v1642_v7, %v496_v58 }
 0x3d6   :  { %v592_v11 = vadd.f32 1.0, %v1644_v10 }
 0x3d7   :  { %598 = vrot.lane.b32.xlu1 %v596_v8, %s1722_s5 }
 0x3d8   :  { %1645 = vrcp.f32 %v592_v11 }
 0x3e2   :  { %v1646_v22 = vpop.eup %1645 }
 0x449   :  { %v599_v13 = vpop.permute.xlu1 %598 }
 0x44a   :  { %v601_v14 = vadd.f32 %v599_v13, %v595_v12 }
 0x44c   :  { %1647 = vtanh.f32 %v601_v14 }
 0x456   :  { %v1648_v26 = vpop.eup %1647 }
 0x457   :  { %v603_v31 = vmul.f32 %v1648_v26, %v1646_v22 }
 0x459   :  { %610 = vrot.lane.b32.xlu1 %v603_v31, %s1722_s5 }
 0x4cb   :  { %v611_v32 = vpop.permute.xlu1 %610 }
 0x4cc   :  { %1370 = vmatmul.mubr.msk.f32.vlgmr.msra.gmra.mrb[0].mxu1 %vm400_vm11, %v611_v32  ;;  %v341_v32 = vadd.f32 %v1954_v19, %v1973_v37 }
 0x4cd   :  { %1500 = vmatpush1.bf16.msra.mxu1 %v1850_v27  ;;  %783 = vmatprep.mubr.f32.mxu1 %v1721_v21 }
 0x4ce   :  { %1502 = vmatprep.subr.bf16.mxu1 %v1860_v30 }
 0x4d1   :  { %1504 = vmatpush1.bf16.msra.mxu1 %v1870_v33 }
 0x4d2   :  { %1506 = vmatprep.subr.bf16.mxu1 %v1879_v36 }
 0x4d5   :  { %1508 = vmatpush1.bf16.msra.mxu1 %v1888_v39 }
 0x4d6   :  { %1510 = vmatprep.subr.bf16.mxu1 %v1897_v42 }
 0x4d9   :  { %1512 = vmatpush1.bf16.msra.mxu1 %v1906_v45 }
 0x4da   :  { %1514 = vmatprep.subr.bf16.mxu1 %v1845_v25 }
 0x59f   :  { %v680_v41 = vpop.f32.mrb[0].mxu1 }
 0x5a0   :  { %v685_v43 = vadd.f32 %v680_v41, %v329_v38  ;;  %v682_v44 = vpop.f32.mrb[1].mxu1  ;;  %v343_v38 = vadd.f32 %v1956_v20, %v1976_v46 }
 0x5a1   :  { %v686_v47 = vadd.f32 %v682_v44, %v331_v40 }
 0x5a2   :  { %v1371_v48 = vmul.f32 -1.442695, %v685_v43 }
 0x5a3   :  { %v1372_v54 = vmul.f32 -1.442695, %v686_v47 }
 0x5a4   :  { %1649 = vpow2.f32 %v1371_v48 }
 0x5a5   :  { %1651 = vtanh.f32 %v686_v47 }
 0x5ae   :  { %v1650_v49 = vpop.eup %1649 }
 0x5af   :  { %v690_v50 = vadd.f32 1.0, %v1650_v49  ;;  %v1652_v51 = vpop.eup %1651 }
 0x5b1   :  { %1653 = vrcp.f32 %v690_v50 }
 0x5b2   :  { %1655 = vpow2.f32 %v1372_v54 }
 0x5bb   :  { %v1654_v52 = vpop.eup %1653 }
 0x5bc   :  { %v701_v53 = vmul.f32 %v1654_v52, %v1652_v51  ;;  %v1656_v15 = vpop.eup %1655  ;;  %v700_v16 = vmul.f32 %v1654_v52, %v601_v14 }
 0x5bd   :  { %v697_v55 = vadd.f32 1.0, %v1656_v15 }
 0x5be   :  { %703 = vrot.lane.b32.xlu0 %v701_v53, %s1722_s5 }
 0x5bf   :  { %1657 = vrcp.f32 %v697_v55 }
 0x5c9   :  { %v1658_v58 = vpop.eup %1657 }
 0x630   :  { %v704_v56 = vpop.permute.xlu0 %703 }
 0x631   :  { %v706_v57 = vadd.f32 %v704_v56, %v700_v16 }
 0x633   :  { %1659 = vtanh.f32 %v706_v57 }
 0x63d   :  { %v1660_v59 = vpop.eup %1659 }
 0x63e   :  { %v708_v60 = vmul.f32 %v1660_v59, %v1658_v58  ;;  %v347_v59 = vadd.f32 %v1958_v23, %v1973_v37 }
 0x640   :  { %715 = vrot.lane.b32.xlu1 %v708_v60, %s1722_s5  ;;  %v349_v60 = vadd.f32 %v1960_v24, %v1976_v46 }
 0x6b2   :  { %v716_v61 = vpop.permute.xlu1 %715 }
 0x6b3   :  { %1373 = vmatmul.mubr.msk.f32.vlgmr.msra.gmra.mrb[2].mxu1 %vm400_vm11, %v716_v61 }
 0x6b4   :  { %1516 = vmatpush1.bf16.msra.mxu1 %v1850_v27  ;;  %888 = vmatprep.mubr.f32.mxu1 %v1721_v21 }
 0x6b5   :  { %1518 = vmatprep.subr.bf16.mxu1 %v1860_v30 }
 0x6b8   :  { %1520 = vmatpush1.bf16.msra.mxu1 %v1870_v33 }
 0x6b9   :  { %1522 = vmatprep.subr.bf16.mxu1 %v1879_v36 }
 0x6bc   :  { %1524 = vmatpush1.bf16.msra.mxu1 %v1888_v39 }
 0x6bd   :  { %1526 = vmatprep.subr.bf16.mxu1 %v1897_v42 }
 0x6c0   :  { %1528 = vmatpush1.bf16.msra.mxu1 %v1906_v45 }
 0x6c1   :  { %1530 = vmatprep.subr.bf16.mxu1 %v1845_v25 }
 0x786   :  { %v785_v0 = vpop.f32.mrb[2].mxu1 }
 0x787   :  { %v790_v1 = vadd.f32 %v785_v0, %v335_v62  ;;  %v787_v2 = vpop.f32.mrb[3].mxu1 }
 0x788   :  { %v791_v3 = vadd.f32 %v787_v2, %v337_v63 }
 0x789   :  { %v1374_v4 = vmul.f32 -1.442695, %v790_v1 }
 0x78a   :  { %v1375_v10 = vmul.f32 -1.442695, %v791_v3 }
 0x78b   :  { %1661 = vpow2.f32 %v1374_v4 }
 0x78c   :  { %1663 = vtanh.f32 %v791_v3 }
 0x795   :  { %v1662_v5 = vpop.eup %1661 }
 0x796   :  { %v795_v6 = vadd.f32 1.0, %v1662_v5  ;;  %v1664_v7 = vpop.eup %1663 }
 0x798   :  { %1665 = vrcp.f32 %v795_v6 }
 0x799   :  { %1667 = vpow2.f32 %v1375_v10 }
 0x7a2   :  { %v1666_v8 = vpop.eup %1665 }
 0x7a3   :  { %v806_v9 = vmul.f32 %v1666_v8, %v1664_v7  ;;  %v1668_v17 = vpop.eup %1667  ;;  %v805_v18 = vmul.f32 %v1666_v8, %v706_v57 }
 0x7a4   :  { %v802_v11 = vadd.f32 1.0, %v1668_v17 }
 0x7a5   :  { %808 = vrot.lane.b32.xlu0 %v806_v9, %s1722_s5 }
 0x7a6   :  { %1669 = vrcp.f32 %v802_v11 }
 0x7b0   :  { %v1670_v14 = vpop.eup %1669 }
 0x817   :  { %v809_v12 = vpop.permute.xlu0 %808 }
 0x818   :  { %v811_v13 = vadd.f32 %v809_v12, %v805_v18  ;;  %v353_v12 = vadd.f32 %v1962_v28, %v1973_v37 }
 0x81a   :  { %1671 = vtanh.f32 %v811_v13 }
 0x824   :  { %v1672_v22 = vpop.eup %1671 }
 0x825   :  { %v813_v26 = vmul.f32 %v1672_v22, %v1670_v14 }
 0x827   :  { %820 = vrot.lane.b32.xlu1 %v813_v26, %s1722_s5 }
 0x899   :  { %v821_v31 = vpop.permute.xlu1 %820 }
 0x89a   :  { %1376 = vmatmul.mubr.msk.f32.vlgmr.msra.gmra.mrb[4].mxu1 %vm400_vm11, %v821_v31 }
 0x89b   :  { %1532 = vmatpush1.bf16.msra.mxu1 %v1850_v27  ;;  %993 = vmatprep.mubr.f32.mxu1 %v1721_v21 }
 0x89c   :  { %1534 = vmatprep.subr.bf16.mxu1 %v1860_v30 }
 0x89f   :  { %1536 = vmatpush1.bf16.msra.mxu1 %v1870_v33 }
 0x8a0   :  { %1538 = vmatprep.subr.bf16.mxu1 %v1879_v36 }
 0x8a3   :  { %1540 = vmatpush1.bf16.msra.mxu1 %v1888_v39 }
 0x8a4   :  { %1542 = vmatprep.subr.bf16.mxu1 %v1897_v42 }
 0x8a7   :  { %1544 = vmatpush1.bf16.msra.mxu1 %v1906_v45 }
 0x8a8   :  { %1546 = vmatprep.subr.bf16.mxu1 %v1845_v25 }
 0x96d   :  { %v890_v40 = vpop.f32.mrb[4].mxu1 }
 0x96e   :  { %v895_v41 = vadd.f32 %v890_v40, %v341_v32  ;;  %v892_v43 = vpop.f32.mrb[5].mxu1 }
 0x96f   :  { %v896_v44 = vadd.f32 %v892_v43, %v343_v38 }
 0x970   :  { %v1377_v47 = vmul.f32 -1.442695, %v895_v41 }
 0x971   :  { %v1378_v53 = vmul.f32 -1.442695, %v896_v44 }
 0x972   :  { %1673 = vpow2.f32 %v1377_v47 }
 0x973   :  { %1675 = vtanh.f32 %v896_v44 }
 0x97c   :  { %v1674_v48 = vpop.eup %1673 }
 0x97d   :  { %v900_v49 = vadd.f32 1.0, %v1674_v48  ;;  %v1676_v50 = vpop.eup %1675  ;;  %v359_v48 = vadd.f32 %v1969_v34, %v1973_v37  ;;  %v1234_v34 = vld [vmem:[%s2113_s6] sm:$0xff]  ;;  %v1236_v37 = vld [vmem:[%s2113_s6 + $0x10] sm:$0xff] }
 0x97f   :  { %1677 = vrcp.f32 %v900_v49  ;;  %v361_v49 = vadd.f32 %v1971_v35, %v1976_v46  ;;  %v1235_v35 = vld [vmem:[%s2113_s6 + $0x8] sm:$0xff] }
 0x980   :  { %1679 = vpow2.f32 %v1378_v53 }
 0x989   :  { %v1678_v51 = vpop.eup %1677 }
 0x98a   :  { %v911_v52 = vmul.f32 %v1678_v51, %v1676_v50  ;;  %v1680_v19 = vpop.eup %1679  ;;  %v910_v20 = vmul.f32 %v1678_v51, %v811_v13 }
 0x98b   :  { %v907_v54 = vadd.f32 1.0, %v1680_v19 }
 0x98c   :  { %913 = vrot.lane.b32.xlu0 %v911_v52, %s1722_s5 }
 0x98d   :  { %1681 = vrcp.f32 %v907_v54 }
 0x997   :  { %v1682_v16 = vpop.eup %1681 }
 0x9fe   :  { %v914_v15 = vpop.permute.xlu0 %913 }
 0x9ff   :  { %v916_v55 = vadd.f32 %v914_v15, %v910_v20 }
 0xa01   :  { %1683 = vtanh.f32 %v916_v55 }
 0xa0b   :  { %v1684_v56 = vpop.eup %1683 }
 0xa0c   :  { %v918_v57 = vmul.f32 %v1684_v56, %v1682_v16  ;;  %v1723_v56 = vmov 0.0|0.0  }
 0xa0d   :  { %1577 = vmatprep.subr.bf16.mxu0 %v1723_v56 }
 0xa0e   :  { %925 = vrot.lane.b32.xlu1 %v918_v57, %s1722_s5  ;;  %v1237_v57 = vld [vmem:[%s2113_s6 + $0x18] sm:$0xff] }
 0xa80   :  { %v926_v58 = vpop.permute.xlu1 %925 }
 0xa81   :  { %1379 = vmatmul.mubr.msk.f32.vlgmr.msra.gmra.mrb[6].mxu1 %vm400_vm11, %v926_v58  ;;  %v1581_v58 = vpack.c.bf16 %v1237_v57, %v1236_v37 }
 0xa82   :  { %1548 = vmatpush1.bf16.msra.mxu1 %v1850_v27  ;;  %1098 = vmatprep.mubr.f32.mxu1 %v1721_v21 }
 0xa83   :  { %1550 = vmatprep.subr.bf16.mxu1 %v1860_v30 }
 0xa86   :  { %1552 = vmatpush1.bf16.msra.mxu1 %v1870_v33 }
 0xa87   :  { %1554 = vmatprep.subr.bf16.mxu1 %v1879_v36 }
 0xa8a   :  { %1556 = vmatpush1.bf16.msra.mxu1 %v1888_v39 }
 0xa8b   :  { %1558 = vmatprep.subr.bf16.mxu1 %v1897_v42 }
 0xa8e   :  { %1560 = vmatpush1.bf16.msra.mxu1 %v1906_v45 }
 0xa8f   :  { %1562 = vmatprep.subr.bf16.mxu1 %v1845_v25 }
 0xb54   :  { %v995_v61 = vpop.f32.mrb[6].mxu1 }
 0xb55   :  { %v1000_v62 = vadd.f32 %v995_v61, %v347_v59  ;;  %v997_v63 = vpop.f32.mrb[7].mxu1  ;;  %v1238_v59 = vld [vmem:[%s2113_s6 + $0x20] sm:$0xff] }
 0xb56   :  { %v1001_v0 = vadd.f32 %v997_v63, %v349_v60  ;;  %v1239_v60 = vld [vmem:[%s2113_s6 + $0x28] sm:$0xff] }
 0xb57   :  { %v1380_v1 = vmul.f32 -1.442695, %v1000_v62  ;;  %v1584_v61 = vpack.c.bf16 %v1239_v60, %v1238_v59  ;;  %v1241_v62 = vld [vmem:[%s2113_s6 + $0x38] sm:$0xff] }
 0xb58   :  { %v1381_v25 = vmul.f32 -1.442695, %v1001_v0 }
 0xb59   :  { %1685 = vpow2.f32 %v1380_v1 }
 0xb5a   :  { %1687 = vtanh.f32 %v1001_v0 }
 0xb63   :  { %v1686_v2 = vpop.eup %1685 }
 0xb64   :  { %v1005_v3 = vadd.f32 1.0, %v1686_v2  ;;  %v1688_v4 = vpop.eup %1687 }
 0xb66   :  { %1689 = vrcp.f32 %v1005_v3 }
 0xb67   :  { %1691 = vpow2.f32 %v1381_v25 }
 0xb70   :  { %v1690_v5 = vpop.eup %1689 }
 0xb71   :  { %v1016_v6 = vmul.f32 %v1690_v5, %v1688_v4  ;;  %v1692_v23 = vpop.eup %1691  ;;  %v1015_v24 = vmul.f32 %v1690_v5, %v916_v55 }
 0xb72   :  { %v1012_v7 = vadd.f32 1.0, %v1692_v23 }
 0xb73   :  { %1018 = vrot.lane.b32.xlu0 %v1016_v6, %s1722_s5 }
 0xb74   :  { %1693 = vrcp.f32 %v1012_v7 }
 0xb7e   :  { %v1694_v10 = vpop.eup %1693 }
 0xbe5   :  { %v1019_v8 = vpop.permute.xlu0 %1018 }
 0xbe6   :  { %v1021_v9 = vadd.f32 %v1019_v8, %v1015_v24  ;;  %v1388_v24 = vld [vmem:[%s2115_s7] ss:$0 sm:$0xff] }
 0xbe8   :  { %1695 = vtanh.f32 %v1021_v9 }
 0xbf2   :  { %v1696_v17 = vpop.eup %1695 }
 0xbf3   :  { %v1023_v11 = vmul.f32 %v1696_v17, %v1694_v10 }
 0xbf5   :  { %1030 = vrot.lane.b32.xlu1 %v1023_v11, %s1722_s5 }
 0xc67   :  { %v1031_v18 = vpop.permute.xlu1 %1030 }
 0xc68   :  { %1382 = vmatmul.mubr.msk.f32.vlgmr.msra.gmra.mrb[8].mxu1 %vm400_vm11, %v1031_v18 }
 0xc69   :  { %1564 = vmatpush1.bf16.msra.mxu1 %v1850_v27  ;;  %1203 = vmatprep.mubr.f32.mxu1 %v1721_v21  ;;  %v355_v27 = vadd.f32 %v1964_v29, %v1976_v46  ;;  %v1578_v46 = vpack.c.bf16 %v1235_v35, %v1234_v34  ;;  %v1240_v21 = vld [vmem:[%s2113_s6 + $0x30] sm:$0xff] }
 0xc6a   :  { %1566 = vmatprep.subr.bf16.mxu1 %v1860_v30  ;;  %v1587_v63 = vpack.c.bf16 %v1241_v62, %v1240_v21 }
 0xc6b   :  { %1579 = vmatpush3.bf16.msra.mxu0 %v1578_v46 }
 0xc6c   :  { %1580 = vmatprep.subr.bf16.mxu0 %v1723_v56 }
 0xc6d   :  { %1568 = vmatpush1.bf16.msra.mxu1 %v1870_v33 }
 0xc6e   :  { %1570 = vmatprep.subr.bf16.mxu1 %v1879_v36 }
 0xc6f   :  { %1582 = vmatpush3.bf16.msra.mxu0 %v1581_v58 }
 0xc70   :  { %1583 = vmatprep.subr.bf16.mxu0 %v1723_v56 }
 0xc71   :  { %1572 = vmatpush1.bf16.msra.mxu1 %v1888_v39 }
 0xc72   :  { %1574 = vmatprep.subr.bf16.mxu1 %v1897_v42 }
 0xc73   :  { %1585 = vmatpush3.bf16.msra.mxu0 %v1584_v61 }
 0xc74   :  { %1586 = vmatprep.subr.bf16.mxu0 %v1723_v56 }
 0xc75   :  { %1576 = vmatpush1.bf16.msra.mxu1 %v1906_v45 }
 0xc77   :  { %1588 = vmatpush3.bf16.msra.mxu0 %v1587_v63 }
 0xd3b   :  { %v1100_v13 = vpop.f32.mrb[8].mxu1 }
 0xd3c   :  { %v1105_v14 = vadd.f32 %v1100_v13, %v353_v12  ;;  %v1102_v22 = vpop.f32.mrb[9].mxu1 }
 0xd3d   :  { %v1106_v30 = vadd.f32 %v1102_v22, %v355_v27 }
 0xd3e   :  { %v1383_v26 = vmul.f32 -1.442695, %v1105_v14 }
 0xd3f   :  { %v1384_v45 = vmul.f32 -1.442695, %v1106_v30 }
 0xd40   :  { %1697 = vpow2.f32 %v1383_v26 }
 0xd41   :  { %1699 = vtanh.f32 %v1106_v30 }
 0xd4a   :  { %v1698_v33 = vpop.eup %1697 }
 0xd4b   :  { %v1110_v36 = vadd.f32 1.0, %v1698_v33  ;;  %v1700_v39 = vpop.eup %1699 }
 0xd4d   :  { %1701 = vrcp.f32 %v1110_v36 }
 0xd4e   :  { %1703 = vpow2.f32 %v1384_v45 }
 0xd57   :  { %v1702_v42 = vpop.eup %1701 }
 0xd58   :  { %v1121_v31 = vmul.f32 %v1702_v42, %v1700_v39  ;;  %v1704_v28 = vpop.eup %1703  ;;  %v1120_v29 = vmul.f32 %v1702_v42, %v1021_v9 }
 0xd59   :  { %v1117_v32 = vadd.f32 1.0, %v1704_v28 }
 0xd5a   :  { %1123 = vrot.lane.b32.xlu0 %v1121_v31, %s1722_s5 }
 0xd5b   :  { %1705 = vrcp.f32 %v1117_v32 }
 0xd65   :  { %v1706_v41 = vpop.eup %1705 }
 0xdcc   :  { %v1124_v38 = vpop.permute.xlu0 %1123 }
 0xdcd   :  { %v1126_v40 = vadd.f32 %v1124_v38, %v1120_v29 }
 0xdcf   :  { %1707 = vtanh.f32 %v1126_v40 }
 0xdd9   :  { %v1708_v43 = vpop.eup %1707 }
 0xdda   :  { %v1128_v44 = vmul.f32 %v1708_v43, %v1706_v41 }
 0xddc   :  { %1135 = vrot.lane.b32.xlu1 %v1128_v44, %s1722_s5 }
 0xe4e   :  { %v1136_v47 = vpop.permute.xlu1 %1135 }
 0xe4f   :  { %1385 = vmatmul.mubr.msk.f32.vlgmr.msra.gmra.mrb[10].mxu1 %vm400_vm11, %v1136_v47 }
 0xf22   :  { %v1205_v50 = vpop.f32.mrb[10].mxu1 }
 0xf23   :  { %v1210_v51 = vadd.f32 %v1205_v50, %v359_v48  ;;  %v1207_v52 = vpop.f32.mrb[11].mxu1 }
 0xf24   :  { %v1211_v53 = vadd.f32 %v1207_v52, %v361_v49 }
 0xf25   :  { %v1386_v19 = vmul.f32 -1.442695, %v1210_v51 }
 0xf26   :  { %v1387_v0 = vmul.f32 -1.442695, %v1211_v53 }
 0xf27   :  { %1709 = vpow2.f32 %v1386_v19 }
 0xf28   :  { %1711 = vtanh.f32 %v1211_v53 }
 0xf31   :  { %v1710_v54 = vpop.eup %1709 }
 0xf32   :  { %v1215_v20 = vadd.f32 1.0, %v1710_v54  ;;  %v1712_v15 = vpop.eup %1711 }
 0xf34   :  { %1713 = vrcp.f32 %v1215_v20 }
 0xf35   :  { %1715 = vpow2.f32 %v1387_v0 }
 0xf3e   :  { %v1714_v55 = vpop.eup %1713 }
 0xf3f   :  { %v1226_v16 = vmul.f32 %v1714_v55, %v1712_v15  ;;  %v1716_v1 = vpop.eup %1715  ;;  %v1225_v3 = vmul.f32 %v1714_v55, %v1126_v40 }
 0xf40   :  { %v1222_v2 = vadd.f32 1.0, %v1716_v1 }
 0xf41   :  { %1228 = vrot.lane.b32.xlu0 %v1226_v16, %s1722_s5 }
 0xf42   :  { %1717 = vrcp.f32 %v1222_v2 }
 0xf4c   :  { %v1718_v6 = vpop.eup %1717 }
 0xfb3   :  { %v1229_v4 = vpop.permute.xlu0 %1228 }
 0xfb4   :  { %v1231_v5 = vadd.f32 %v1229_v4, %v1225_v3 }
 0xfb6   :  { %1719 = vtanh.f32 %v1231_v5 }
 0xfc0   :  { %v1720_v25 = vpop.eup %1719 }
 0xfc1   :  { %v1233_v23 = vmul.f32 %v1720_v25, %v1718_v6 }
 0xfc3   :  { %1250 = vrot.lane.b32.xlu1 %v1233_v23, %s1722_s5 }
0x1035   :  { %v1251_v7 = vpop.permute.xlu1 %1250 }
0x1036   :  { %1331 = vst.msk [vmem:[%s2114_s9 - $0x2] sm:$0xfc] %vm1330_vm13, %v1251_v7  ;;  %1439 = vmatmul.mubr.msk.f32.vlgmr.msra.gmra.mrb[24].mxu0 %vm400_vm11, %v1251_v7 }
0x1109   :  { %v1320_v8 = vpop.f32.mrb[24].mxu0 }
0x110a   :  { %v1321_v9 = vadd.f32 %v1388_v24, %v1320_v8  ;;  %v1440_v10 = vpop.f32.mrb[25].mxu0 }
0x110c   :  { %vm1324_vm14 = vcmp.gt.f32.partialorder %v1321_v9, 0.0  ;;  %v1325_v17 = vmul.f32 0.1, %v1321_v9 }
0x110e   :  { %v1326_v11 = vsel %vm1324_vm14, %v1321_v9, %v1325_v17 }
0x110f   :  { %1328 = vst.msk [vmem:[%s2116_s8] sm:$0x3] %vm1327_vm15, %v1326_v11 }

// kernel: vae_forward.3
= control target key start
LH: loop header
LB: loop body
LE: loop exit
PB: predicated region body
PF: predicated region fallthrough
CT: control target
= control target key end

     0   :  { %vm52_vm0 = vcmask 1046528   ;;  %s3086_s24 = smov 64   ;;  %vm103_vm1 = vcmask 1045504   ;;  %vm138_vm2 = vcmask 523264   ;;  %vm3089_vm3 = vmmov 0   ;;  %s4123_s0 = inlined_call_operand.vmem [shape: f32[2,3,13,64], index: 0, kind: input, shape index: {}]   ;;  %s4124_s1 = inlined_call_operand.vmem [shape: f32[576,64], index: 1, kind: input, shape index: {}]   ;;  %s4125_s3 = inlined_call_operand.vmem [shape: f32[192,32], index: 3, kind: input, shape index: {}]   ;;  %s4126_s2 = inlined_call_operand.vmem [shape: f32[1,64], index: 2, kind: input, shape index: {}]   ;;  %s4127_s4 = inlined_call_operand.vmem [shape: f32[1,32], index: 4, kind: input, shape index: {}]   ;;  %s4128_s5 = inlined_call_operand.vmem [shape: f32[2,5,32], index: 5, kind: output, shape index: {}]  }
   0x1   :  { %v3124_v0 = vld [vmem:[%s4123_s0 + $0x10] sm:$0xff]  ;;  %v3129_v1 = vld [vmem:[%s4123_s0 + $0x20] sm:$0xff]  ;;  %v3134_v2 = vld [vmem:[%s4123_s0 + $0x28] sm:$0x1f] }
   0x2   :  { %36 = vrot.lane.b32.xlu0 %v3124_v0, %s3086_s24  ;;  %v85_v3 = vrot.slane %v3129_v1, 1  ;;  %v86_v4 = vrot.slane %v3134_v2, 1  ;;  %v3143_v5 = vld [vmem:[%s4123_s0] sm:$0xff]  ;;  %v114_v6 = vrot.slane %v3124_v0, 2  ;;  %v3149_v7 = vld [vmem:[%s4123_s0 + $0x8] sm:$0x1f] }
   0x3   :  { %v53_v9 = vrot.slane %v3143_v5, 1  ;;  %v54_v10 = vrot.slane %v3149_v7, 1  ;;  %v3159_v11 = vld [vmem:[%s4123_s0 + $0x18] sm:$0x1f]  ;;  %v3171_v15 = vld [vmem:[%s4123_s0 + $0x30] sm:$0xff]  ;;  %v171_v17 = vld [vmem:[%s4124_s1 + $0x80] sm:$0xff] }
   0x4   :  { %v87_v8 = vsel %vm52_vm0, %v85_v3, %v86_v4  ;;  %v115_v12 = vrot.slane %v3159_v11, 2  ;;  %v3176_v16 = vld [vmem:[%s4123_s0 + $0x38] sm:$0x1f]  ;;  %v172_v18 = vld [vmem:[%s4124_s1 + $0x88] sm:$0xff]  ;;  %v3188_v19 = vld [vmem:[%s4123_s0 + $0x40] sm:$0xff]  ;;  %v56_v22 = vrot.slane %v3171_v15, 1 }
   0x5   :  { %91 = vrot.lane.b32.xlu1 %v87_v8, %s3086_s24  ;;  %v55_v13 = vsel %vm52_vm0, %v53_v9, %v54_v10  ;;  %v203_v20 = vld [vmem:[%s4124_s1 + $0x180] sm:$0xff]  ;;  %v204_v21 = vld [vmem:[%s4124_s1 + $0x188] sm:$0xff]  ;;  %v57_v23 = vrot.slane %v3176_v16, 1  ;;  %v3201_v24 = vld [vmem:[%s4123_s0 + $0x50] sm:$0xff]  ;;  %v2969_v27 = vpack.c.bf16 %v172_v18, %v171_v17  ;;  %v71_v31 = vrot.slane %v3124_v0, 1 }
   0x6   :  { %59 = vrot.lane.b32.xlu0 %v55_v13, %s3086_s24  ;;  %v116_v14 = vsel %vm103_vm1, %v114_v6, %v115_v12  ;;  %v3206_v25 = vld [vmem:[%s4123_s0 + $0x58] sm:$0x1f]  ;;  %v155_v26 = vld [vmem:[%s4124_s1] sm:$0xff]  ;;  %v156_v28 = vld [vmem:[%s4124_s1 + $0x8] sm:$0xff]  ;;  %v3001_v33 = vpack.c.bf16 %v204_v21, %v203_v20  ;;  %v88_v37 = vrot.slane %v3201_v24, 1  ;;  %v72_v46 = vrot.slane %v3159_v11, 1 }
   0x7   :  { %v187_v29 = vld [vmem:[%s4124_s1 + $0x100] sm:$0xff]  ;;  %v188_v30 = vld [vmem:[%s4124_s1 + $0x108] sm:$0xff]  ;;  %v173_v34 = vld [vmem:[%s4124_s1 + $0x90] sm:$0xff]  ;;  %v58_v41 = vsel %vm52_vm0, %v56_v22, %v57_v23  ;;  %v89_v42 = vrot.slane %v3206_v25, 1  ;;  %2970 = vmatprep.subr.bf16.mxu0 %v2969_v27  ;;  %v2971_v43 = vpack.c.bf16 %v156_v28, %v155_v26  ;;  %v117_v56 = vrot.slane %v3188_v19, 2 }
   0x8   :  { %v3226_v32 = vld [vmem:[%s4123_s0 + $0x48] sm:$0x1f]  ;;  %v174_v35 = vld [vmem:[%s4124_s1 + $0x98] sm:$0xff]  ;;  %v205_v36 = vld [vmem:[%s4124_s1 + $0x190] sm:$0xff]  ;;  %3002 = vmatprep.subr.bf16.mxu1 %v3001_v33  ;;  %v3003_v48 = vpack.c.bf16 %v188_v30, %v187_v29  ;;  %v3276_v55 = vsel %vm52_vm0, %v71_v31, %v72_v46  ;;  %v74_v61 = vrot.slane %v3188_v19, 1 }
   0x9   :  { %120 = vrot.lane.b32.xlu1 %v116_v14, %s3086_s24  ;;  %v206_v38 = vld [vmem:[%s4124_s1 + $0x198] sm:$0xff]  ;;  %v157_v39 = vld [vmem:[%s4124_s1 + $0x10] sm:$0xff]  ;;  %v175_v47 = vld [vmem:[%s4124_s1 + $0xa0] sm:$0xff]  ;;  %v2973_v49 = vpack.c.bf16 %v174_v35, %v173_v34  ;;  %2972 = vmatpush3.bf16.msra.mxu0 %v2971_v43  ;;  %v118_v57 = vrot.slane %v3226_v32, 2  ;;  %v90_v62 = vsel %vm52_vm0, %v88_v37, %v89_v42  ;;  %v75_v17 = vrot.slane %v3226_v32, 1 }
   0xa   :  { %38 = vrot.lane.b32.xlu0 %v3159_v11, %s3086_s24  ;;  %v158_v40 = vld [vmem:[%s4124_s1 + $0x18] sm:$0xff]  ;;  %v189_v44 = vld [vmem:[%s4124_s1 + $0x110] sm:$0xff]  ;;  %v176_v50 = vld [vmem:[%s4124_s1 + $0xa8] sm:$0xff]  ;;  %v3005_v53 = vpack.c.bf16 %v206_v38, %v205_v36  ;;  %3004 = vmatpush3.bf16.msra.mxu1 %v3003_v48 }
   0xb   :  { %v190_v45 = vld [vmem:[%s4124_s1 + $0x118] sm:$0xff]  ;;  %v207_v51 = vld [vmem:[%s4124_s1 + $0x1a0] sm:$0xff]  ;;  %v208_v52 = vld [vmem:[%s4124_s1 + $0x1a8] sm:$0xff]  ;;  %v2975_v54 = vpack.c.bf16 %v158_v40, %v157_v39  ;;  %2974 = vmatprep.subr.bf16.mxu0 %v2973_v49  ;;  %v2977_v63 = vpack.c.bf16 %v176_v50, %v175_v47  ;;  %v3335_v29 = vsel %vm52_vm0, %v74_v61, %v75_v17 }
   0xc   :  { %v3007_v58 = vpack.c.bf16 %v190_v45, %v189_v44  ;;  %v159_v59 = vld [vmem:[%s4124_s1 + $0x20] sm:$0xff]  ;;  %v160_v60 = vld [vmem:[%s4124_s1 + $0x28] sm:$0xff]  ;;  %3006 = vmatprep.subr.bf16.mxu1 %v3005_v53  ;;  %v3009_v0 = vpack.c.bf16 %v208_v52, %v207_v51  ;;  %v177_v8 = vld [vmem:[%s4124_s1 + $0xb0] sm:$0xff] }
   0xd   :  { %40 = vrot.lane.b32.xlu1 %v3188_v19, %s3086_s24  ;;  %v191_v3 = vld [vmem:[%s4124_s1 + $0x120] sm:$0xff]  ;;  %v192_v6 = vld [vmem:[%s4124_s1 + $0x128] sm:$0xff]  ;;  %v178_v9 = vld [vmem:[%s4124_s1 + $0xb8] sm:$0xff]  ;;  %2976 = vmatpush3.bf16.msra.mxu0 %v2975_v54  ;;  %v2979_v14 = vpack.c.bf16 %v160_v60, %v159_v59 }
   0xe   :  { %61 = vrot.lane.b32.xlu0 %v54_v10, %s3086_s24  ;;  %v209_v10 = vld [vmem:[%s4124_s1 + $0x1b0] sm:$0xff]  ;;  %v210_v13 = vld [vmem:[%s4124_s1 + $0x1b8] sm:$0xff]  ;;  %3008 = vmatpush3.bf16.msra.mxu1 %v3007_v58  ;;  %v3011_v18 = vpack.c.bf16 %v192_v6, %v191_v3  ;;  %v2981_v21 = vpack.c.bf16 %v178_v9, %v177_v8  ;;  %v179_v28 = vld [vmem:[%s4124_s1 + $0xc0] sm:$0xff] }
   0xf   :  { %v161_v19 = vld [vmem:[%s4124_s1 + $0x30] sm:$0xff]  ;;  %v162_v20 = vld [vmem:[%s4124_s1 + $0x38] sm:$0xff]  ;;  %2978 = vmatprep.subr.bf16.mxu0 %v2977_v63  ;;  %3010 = vmatprep.subr.bf16.mxu1 %v3009_v0  ;;  %v3013_v22 = vpack.c.bf16 %v210_v13, %v209_v10  ;;  %v180_v30 = vld [vmem:[%s4124_s1 + $0xc8] sm:$0xff] }
  0x10   :  { %v193_v26 = vld [vmem:[%s4124_s1 + $0x130] sm:$0xff]  ;;  %v194_v27 = vld [vmem:[%s4124_s1 + $0x138] sm:$0xff]  ;;  %v211_v31 = vld [vmem:[%s4124_s1 + $0x1c0] sm:$0xff]  ;;  %v2983_v34 = vpack.c.bf16 %v162_v20, %v161_v19  ;;  %v2985_v37 = vpack.c.bf16 %v180_v30, %v179_v28  ;;  %v3087_v28 = vmov 0.0|0.0   ;;  %v3088_v30 = vmov 1966171168  }
  0x11   :  { %63 = vrot.lane.b32.xlu1 %v58_v41, %s3086_s24  ;;  %v212_v33 = vld [vmem:[%s4124_s1 + $0x1c8] sm:$0xff]  ;;  %2980 = vmatpush3.bf16.msra.mxu0 %v2979_v14  ;;  %v3015_v35 = vpack.c.bf16 %v194_v27, %v193_v26  ;;  %v195_v39 = vld [vmem:[%s4124_s1 + $0x140] sm:$0xff]  ;;  %v181_v41 = vld [vmem:[%s4124_s1 + $0xd0] sm:$0xff] }
  0x12   :  { %93 = vrot.lane.b32.xlu0 %v86_v4, %s3086_s24  ;;  %v119_v4 = vsel %vm103_vm1, %v117_v56, %v118_v57  ;;  %3012 = vmatpush3.bf16.msra.mxu1 %v3011_v18  ;;  %v164_v36 = vld [vmem:[%s4124_s1 + $0x48] sm:$0xff]  ;;  %v3017_v38 = vpack.c.bf16 %v212_v33, %v211_v31  ;;  %v182_v43 = vld [vmem:[%s4124_s1 + $0xd8] sm:$0xff]  ;;  %v213_v44 = vld [vmem:[%s4124_s1 + $0x1d0] sm:$0xff]  ;;  %v255_v31 = vunpack.c.l.s4 %v3088_v30  ;;  %v257_v33 = vlaneseq }
  0x13   :  { %2982 = vmatprep.subr.bf16.mxu0 %v2981_v21  ;;  %3014 = vmatprep.subr.bf16.mxu1 %v3013_v22  ;;  %v196_v40 = vld [vmem:[%s4124_s1 + $0x148] sm:$0xff]  ;;  %v214_v45 = vld [vmem:[%s4124_s1 + $0x1d8] sm:$0xff]  ;;  %v165_v49 = vld [vmem:[%s4124_s1 + $0x50] sm:$0xff]  ;;  %v2989_v52 = vpack.c.bf16 %v182_v43, %v181_v41 }
  0x14   :  { %v3019_v48 = vpack.c.bf16 %v196_v40, %v195_v39  ;;  %v166_v50 = vld [vmem:[%s4124_s1 + $0x58] sm:$0xff]  ;;  %v197_v51 = vld [vmem:[%s4124_s1 + $0x150] sm:$0xff]  ;;  %v3021_v53 = vpack.c.bf16 %v214_v45, %v213_v44  ;;  %v183_v54 = vld [vmem:[%s4124_s1 + $0xe0] sm:$0xff]  ;;  %v135_v39 = vrot.slane %v3201_v24, 2  ;;  %v136_v40 = vrot.slane %v3206_v25, 2 }
  0x15   :  { %95 = vrot.lane.b32.xlu1 %v90_v62, %s3086_s24  ;;  %2984 = vmatpush3.bf16.msra.mxu0 %v2983_v34  ;;  %v184_v56 = vld [vmem:[%s4124_s1 + $0xe8] sm:$0xff]  ;;  %v215_v58 = vld [vmem:[%s4124_s1 + $0x1e0] sm:$0xff]  ;;  %v2991_v60 = vpack.c.bf16 %v166_v50, %v165_v49  ;;  %v185_v6 = vld [vmem:[%s4124_s1 + $0xf0] sm:$0xff]  ;;  %v132_v34 = vrot.slane %v3129_v1, 2 }
  0x16   :  { %122 = vrot.lane.b32.xlu0 %v115_v12, %s3086_s24  ;;  %v163_v12 = vld [vmem:[%s4124_s1 + $0x40] sm:$0xff]  ;;  %3016 = vmatpush3.bf16.msra.mxu1 %v3015_v35  ;;  %v216_v59 = vld [vmem:[%s4124_s1 + $0x1e8] sm:$0xff]  ;;  %v2993_v62 = vpack.c.bf16 %v184_v56, %v183_v54  ;;  %v186_v8 = vld [vmem:[%s4124_s1 + $0xf8] sm:$0xff]  ;;  %v133_v35 = vrot.slane %v3134_v2, 2  ;;  %v137_v44 = vsel %vm103_vm1, %v135_v39, %v136_v40 }
  0x17   :  { %v2987_v47 = vpack.c.bf16 %v164_v36, %v163_v12  ;;  %2986 = vmatprep.subr.bf16.mxu0 %v2985_v37  ;;  %3018 = vmatprep.subr.bf16.mxu1 %v3017_v38  ;;  %v168_v63 = vld [vmem:[%s4124_s1 + $0x68] sm:$0xff]  ;;  %v199_v0 = vld [vmem:[%s4124_s1 + $0x160] sm:$0xff]  ;;  %v3025_v3 = vpack.c.bf16 %v216_v59, %v215_v58  ;;  %v217_v9 = vld [vmem:[%s4124_s1 + $0x1f0] sm:$0xff]  ;;  %v256_v12 = vunpack.c.0.s8 %v255_v31  ;;  %v3449_v36 = vshrl.u32 %v257_v33, 7 }
  0x18   :  { %v218_v10 = vld [vmem:[%s4124_s1 + $0x1f8] sm:$0xff]  ;;  %v169_v18 = vld [vmem:[%s4124_s1 + $0x70] sm:$0xff]  ;;  %v134_v37 = vsel %vm103_vm1, %v132_v34, %v133_v35  ;;  %v427_v49 = vcombine.high %v137_v44, %v137_v44 }
  0x19   :  { %124 = vrot.lane.b32.xlu1 %v119_v4, %s3086_s24  ;;  %2988 = vmatpush3.bf16.msra.mxu0 %v2987_v47  ;;  %v2997_v4 = vpack.c.bf16 %v186_v8, %v185_v6  ;;  %v170_v19 = vld [vmem:[%s4124_s1 + $0x78] sm:$0xff]  ;;  %v3029_v20 = vpack.c.bf16 %v218_v10, %v217_v9  ;;  %v201_v21 = vld [vmem:[%s4124_s1 + $0x170] sm:$0xff]  ;;  %v3453_v38 = vsub.s32 %v256_v12, %v3449_v36  ;;  %v108_v9 = vrot.slane %v3176_v16, 2 }
  0x1a   :  { %42 = vrot.lane.b32.xlu0 %v3226_v32, %s3086_s24  ;;  %3020 = vmatpush3.bf16.msra.mxu1 %v3019_v48  ;;  %v202_v22 = vld [vmem:[%s4124_s1 + $0x178] sm:$0xff]  ;;  %v2999_v26 = vpack.c.bf16 %v170_v19, %v169_v18  ;;  %v253_v41 = vcombine.high %v134_v37, %v134_v37 }
  0x1b   :  { %2990 = vmatprep.subr.bf16.mxu0 %v2989_v52  ;;  %3022 = vmatprep.subr.bf16.mxu1 %v3021_v53  ;;  %v3031_v27 = vpack.c.bf16 %v202_v22, %v201_v21  ;;  %v288_v43 = vrot.slane %v134_v37, %v3453_v38  ;;  %v388_v47 = vrot.slane %v133_v35, %v3453_v38  ;;  %v104_v52 = vrot.slane %v3143_v5, 2  ;;  %v3515_v35 = vld [vmem:[%s4124_s1 + $0x200] sm:$0xff] }
  0x1c   :  { %v295_v45 = vrot.slane %v253_v41, %v3453_v38  ;;  %v105_v53 = vrot.slane %v3149_v7, 2  ;;  %v462_v58 = vrot.slane %v137_v44, %v3453_v38  ;;  %v3525_v44 = vld [vmem:[%s4124_s1 + $0x208] sm:$0xff] }
  0x1d   :  { %65 = vrot.lane.b32.xlu1 %v57_v23, %s3086_s24  ;;  %v198_v23 = vld [vmem:[%s4124_s1 + $0x158] sm:$0xff]  ;;  %2992 = vmatpush3.bf16.msra.mxu0 %v2991_v60  ;;  %v300_v48 = vcombine.high %v288_v43, %v288_v43  ;;  %v3464_v54 = vrot.slane %v288_v43, %v3453_v38  ;;  %v469_v60 = vrot.slane %v427_v49, %v3453_v38 }
  0x1e   :  { %97 = vrot.lane.b32.xlu0 %v89_v42, %s3086_s24  ;;  %v3023_v61 = vpack.c.bf16 %v198_v23, %v197_v51  ;;  %v167_v42 = vld [vmem:[%s4124_s1 + $0x60] sm:$0xff]  ;;  %2994 = vmatprep.subr.bf16.mxu0 %v2993_v62  ;;  %v391_v51 = vcombine.high %v388_v47, %v388_v47  ;;  %v301_v23 = vcombine.high %v295_v45, %v295_v45 }
  0x1f   :  { %v2995_v13 = vpack.c.bf16 %v168_v63, %v167_v42  ;;  %v3467_v56 = vrot.slane %v300_v48, %v3453_v38  ;;  %v3475_v42 = vrot.slane %v388_v47, %v3453_v38  ;;  %v475_v21 = vcombine.high %v469_v60, %v469_v60  ;;  %v3535_v47 = vld [vmem:[%s4124_s1 + $0x218] sm:$0xff] }
  0x20   :  { %3024 = vmatpush3.bf16.msra.mxu1 %v3023_v61  ;;  %v562_v61 = vrot.slane %v136_v40, %v3453_v38  ;;  %v419_v63 = vrot.slane %v391_v51, %v3453_v38  ;;  %v3485_v6 = vrot.slane %v301_v23, %v3453_v38  ;;  %v3510_v34 = vrot.slane %v469_v60, %v3453_v38  ;;  %v3556_v60 = vld [vmem:[%s4124_s1 + $0x228] sm:$0xff] }
  0x21   :  { %126 = vrot.lane.b32.xlu1 %v118_v57, %s3086_s24  ;;  %v200_v57 = vld [vmem:[%s4124_s1 + $0x168] sm:$0xff]  ;;  %3026 = vmatprep.subr.bf16.mxu1 %v3025_v3  ;;  %v2815_v10 = vcombine.low %v3464_v54, %v3467_v56  ;;  %v3541_v49 = vrot.slane %v475_v21, %v3453_v38 }
  0x22   :  { %v3027_v14 = vpack.c.bf16 %v200_v57, %v199_v0  ;;  %2996 = vmatpush3.bf16.msra.mxu0 %v2995_v13  ;;  %v3479_v0 = vrot.slane %v295_v45, %v3453_v38  ;;  %v106_v57 = vsel %vm103_vm1, %v104_v52, %v105_v53  ;;  %v474_v13 = vcombine.high %v462_v58, %v462_v58  ;;  %v3530_v45 = vld [vmem:[%s4124_s1 + $0x210] sm:$0xff] }
  0x23   :  { %2998 = vmatprep.subr.bf16.mxu0 %v2997_v4  ;;  %v565_v22 = vcombine.high %v562_v61, %v562_v61  ;;  %v2823_v12 = vcombine.low %v3475_v42, %v419_v63 }
  0x24   :  { %3028 = vmatpush3.bf16.msra.mxu1 %v3027_v14  ;;  %v3538_v48 = vrot.slane %v474_v13, %v3453_v38  ;;  %v2819_v51 = vcombine.low %v3479_v0, %v3485_v6  ;;  %v2821_v63 = vcombine.high %v3479_v0, %v3485_v6  ;;  %v3580_v6 = vld [vmem:[%s4124_s1 + $0x230] sm:$0xff] }
  0x25   :  { %3030 = vmatprep.subr.bf16.mxu1 %v3029_v20 }
  0x26   :  { %3000 = vmatpush3.bf16.msra.mxu0 %v2999_v26  ;;  %v3499_v26 = vrot.slane %v562_v61, %v3453_v38  ;;  %v3034_v61 = vpack.c.bf16 %v3525_v44, %v3515_v35 }
  0x27   :  { %3033 = vmatprep.subr.bf16.mxu0 %v3087_v28 }
  0x28   :  { %3032 = vmatpush3.bf16.msra.mxu1 %v3031_v27 }
  0x29   :  { %3045 = vmatprep.subr.bf16.mxu1 %v3087_v28 }
  0x74   :  { %v37_v50 = vpop.permute.xlu0 %36 }
  0x75   :  { %v139_v62 = vsel %vm138_vm2, %v3143_v5, %v37_v50  ;;  %v107_v5 = vrot.slane %v3171_v15, 2  ;;  %v3544_v50 = vrot.slane %v565_v22, %v3453_v38 }
  0x77   :  { %v92_v59 = vpop.permute.xlu1 %91  ;;  %v3504_v33 = vsel %vm103_vm1, %v107_v5, %v108_v9 }
  0x78   :  { %v60_v3 = vpop.permute.xlu0 %59  ;;  %v147_v19 = vsel %vm138_vm2, %v3276_v55, %v92_v59  ;;  %v3507_v55 = vrot.slane %v462_v58, %v3453_v38  ;;  %v3551_v59 = vld [vmem:[%s4124_s1 + $0x220] sm:$0xff] }
  0x79   :  { %v143_v8 = vsel %vm138_vm2, %v3129_v1, %v60_v3  ;;  %v2817_v1 = vcombine.high %v3464_v54, %v3467_v56  ;;  %v3565_v3 = vrot.slane %v2823_v12, %v3453_v38  ;;  %v3040_v0 = vpack.c.bf16 %v3556_v60, %v3551_v59 }
  0x7a   :  { %v249_v14 = vcombine.low %v139_v62, %v143_v8  ;;  %v250_v4 = vcombine.high %v139_v62, %v143_v8  ;;  %v3037_v62 = vpack.c.bf16 %v3535_v47, %v3530_v45 }
  0x7b   :  { %v121_v18 = vpop.permute.xlu1 %120 }
  0x7c   :  { %v151_v20 = vsel %vm138_vm2, %v106_v57, %v121_v18  ;;  %v39_v31 = vpop.permute.xlu0 %38  ;;  %v260_v37 = vrot.slane %v249_v14, %v3453_v38  ;;  %v267_v39 = vrot.slane %v250_v4, %v3453_v38 }
  0x7d   :  { %v251_v27 = vcombine.low %v147_v19, %v151_v20  ;;  %v252_v30 = vcombine.high %v147_v19, %v151_v20  ;;  %v140_v4 = vsel %vm138_vm2, %v3149_v7, %v39_v31  ;;  %v3585_v19 = vld [vmem:[%s4124_s1 + $0x238] sm:$0xff]  ;;  %v3588_v20 = vrot.slane %v2815_v10, %v3453_v38 }
  0x7f   :  { %v274_v40 = vrot.slane %v251_v27, %v3453_v38  ;;  %v281_v41 = vrot.slane %v252_v30, %v3453_v38  ;;  %v41_v43 = vpop.permute.xlu1 %40  ;;  %v3594_v30 = vrot.slane %v2819_v51, %v3453_v38 }
  0x80   :  { %v62_v58 = vpop.permute.xlu0 %61  ;;  %v141_v51 = vsel %vm138_vm2, %v3171_v15, %v41_v43 }
  0x81   :  { %v296_v52 = vcombine.low %v260_v37, %v274_v40  ;;  %v297_v23 = vcombine.high %v260_v37, %v274_v40  ;;  %v298_v54 = vcombine.low %v267_v39, %v281_v41  ;;  %v299_v56 = vcombine.high %v267_v39, %v281_v41 }
  0x82   :  { %v144_v18 = vsel %vm138_vm2, %v3134_v2, %v62_v58  ;;  %v3591_v2 = vrot.slane %v2817_v1, %v3453_v38  ;;  %v3599_v39 = vrot.slane %v2821_v63, %v3453_v38  ;;  %v3043_v1 = vpack.c.bf16 %v3585_v19, %v3580_v6 }
  0x83   :  { %v308_v57 = vrot.slane %v296_v52, %v3453_v38  ;;  %v315_v8 = vrot.slane %v298_v54, %v3453_v38  ;;  %v322_v5 = vrot.slane %v297_v23, %v3453_v38  ;;  %v329_v13 = vrot.slane %v299_v56, %v3453_v38  ;;  %v64_v14 = vpop.permute.xlu1 %63 }
  0x84   :  { %v94_v21 = vpop.permute.xlu0 %93  ;;  %v145_v31 = vsel %vm138_vm2, %v3201_v24, %v64_v14  ;;  %v366_v40 = vcombine.low %v140_v4, %v144_v18 }
  0x85   :  { %v2814_v22 = vcombine.low %v308_v57, %v322_v5  ;;  %v2816_v27 = vcombine.high %v308_v57, %v322_v5  ;;  %v2818_v12 = vcombine.low %v315_v8, %v329_v13  ;;  %v2820_v37 = vcombine.high %v315_v8, %v329_v13 }
  0x86   :  { %v148_v24 = vsel %vm138_vm2, %v72_v46, %v94_v21  ;;  %v423_v56 = vcombine.low %v141_v51, %v145_v31  ;;  %v712_v8 = vcombine.low %v3588_v20, %v3591_v2  ;;  %v424_v5 = vcombine.high %v141_v51, %v145_v31  ;;  %v1970_v20 = vld [vmem:[%s4125_s3] sm:$0xff]  ;;  %v1971_v2 = vld [vmem:[%s4125_s3 + $0x8] sm:$0xff] }
  0x87   :  { %v96_v10 = vpop.permute.xlu1 %95  ;;  %v660_v41 = vrot.slane %v2814_v22, %v3453_v38  ;;  %v674_v52 = vrot.slane %v2816_v27, %v3453_v38  ;;  %v688_v23 = vrot.slane %v2818_v12, %v3453_v38  ;;  %v702_v54 = vrot.slane %v2820_v37, %v3453_v38 }
  0x88   :  { %v123_v58 = vpop.permute.xlu0 %122  ;;  %v374_v46 = vrot.slane %v366_v40, %v3453_v38  ;;  %v149_v21 = vsel %vm138_vm2, %v3335_v29, %v96_v10  ;;  %v434_v27 = vrot.slane %v423_v56, %v3453_v38  ;;  %v441_v56 = vrot.slane %v424_v5, %v3453_v38 }
  0x89   :  { %v711_v63 = vcombine.high %v660_v41, %v674_v52  ;;  %v710_v57 = vcombine.low %v660_v41, %v674_v52  ;;  %v152_v15 = vsel %vm138_vm2, %v105_v53, %v123_v58  ;;  %v714_v43 = vcombine.high %v688_v23, %v702_v54 }
  0x8a   :  { %v713_v11 = vcombine.low %v688_v23, %v702_v54  ;;  %v367_v13 = vcombine.low %v148_v24, %v152_v15 }
  0x8b   :  { %v125_v14 = vpop.permute.xlu1 %124  ;;  %v736_v4 = vrot.slane %v711_v63, %v3453_v38  ;;  %v722_v18 = vrot.slane %v710_v57, %v3453_v38  ;;  %v757_v7 = vrot.slane %v714_v43, %v3453_v38 }
  0x8c   :  { %v153_v22 = vsel %vm138_vm2, %v3504_v33, %v125_v14  ;;  %v743_v53 = vrot.slane %v713_v11, %v3453_v38  ;;  %v381_v31 = vrot.slane %v367_v13, %v3453_v38  ;;  %v43_v40 = vpop.permute.xlu0 %42 }
  0x8d   :  { %v425_v12 = vcombine.low %v149_v21, %v153_v22  ;;  %v426_v37 = vcombine.high %v149_v21, %v153_v22  ;;  %v761_v41 = vcombine.low %v736_v4, %v757_v7  ;;  %v762_v52 = vcombine.high %v736_v4, %v757_v7 }
  0x8e   :  { %v142_v51 = vsel %vm138_vm2, %v3176_v16, %v43_v40  ;;  %v758_v29 = vcombine.low %v722_v18, %v743_v53  ;;  %v389_v10 = vcombine.low %v374_v46, %v381_v31  ;;  %v390_v24 = vcombine.high %v374_v46, %v381_v31 }
  0x8f   :  { %v448_v33 = vrot.slane %v425_v12, %v3453_v38  ;;  %v455_v23 = vrot.slane %v426_v37, %v3453_v38  ;;  %v66_v54 = vpop.permute.xlu1 %65  ;;  %1186 = vmatprep.mubr.f32.mxu0 %v761_v41  ;;  %1266 = vmatprep.mubr.f32.mxu1 %v762_v52  ;;  %v759_v63 = vcombine.high %v722_v18, %v743_v53 }
  0x90   :  { %v146_v58 = vsel %vm138_vm2, %v3206_v25, %v66_v54  ;;  %v398_v57 = vrot.slane %v389_v10, %v3453_v38  ;;  %v405_v15 = vrot.slane %v390_v24, %v3453_v38  ;;  %1187 = vmatmul.mubr.f32.vlgmr.msra.gmra.mrb[0].mxu0 %v758_v29  ;;  %v98_v46 = vpop.permute.xlu0 %97 }
  0x91   :  { %v470_v43 = vcombine.low %v434_v27, %v448_v33  ;;  %v471_v11 = vcombine.high %v434_v27, %v448_v33  ;;  %v472_v13 = vcombine.low %v441_v56, %v455_v23  ;;  %v473_v14 = vcombine.high %v441_v56, %v455_v23  ;;  %1267 = vmatmul.mubr.f32.vlgmr.msra.gmra.mrb[0].mxu1 %v759_v63 }
  0x92   :  { %v540_v4 = vcombine.low %v142_v51, %v146_v58  ;;  %v150_v5 = vsel %vm138_vm2, %v75_v17, %v98_v46  ;;  %v421_v25 = vcombine.high %v398_v57, %v3475_v42  ;;  %v2822_v21 = vcombine.low %v398_v57, %v405_v15  ;;  %3035 = vmatpush3.bf16.msra.mxu0 %v3034_v61 }
  0x93   :  { %v482_v18 = vrot.slane %v470_v43, %v3453_v38  ;;  %v496_v22 = vrot.slane %v471_v11, %v3453_v38  ;;  %v127_v7 = vpop.permute.xlu1 %126  ;;  %v489_v53 = vrot.slane %v472_v13, %v3453_v38  ;;  %v503_v27 = vrot.slane %v473_v14, %v3453_v38  ;;  %3036 = vmatprep.subr.bf16.mxu0 %v3087_v28 }
  0x94   :  { %v548_v32 = vrot.slane %v540_v4, %v3453_v38  ;;  %v154_v17 = vsel %vm138_vm2, %v108_v9, %v127_v7 }
  0x95   :  { %v532_v31 = vcombine.low %v482_v18, %v3507_v55  ;;  %v533_v12 = vcombine.high %v482_v18, %v3507_v55  ;;  %v536_v37 = vcombine.low %v496_v22, %v3538_v48  ;;  %v537_v35 = vcombine.high %v496_v22, %v3538_v48 }
  0x96   :  { %v534_v44 = vcombine.low %v489_v53, %v3510_v34  ;;  %v535_v61 = vcombine.high %v489_v53, %v3510_v34  ;;  %v538_v40 = vcombine.low %v503_v27, %v3541_v49  ;;  %v539_v16 = vcombine.high %v503_v27, %v3541_v49  ;;  %3038 = vmatpush3.bf16.msra.mxu0 %v3037_v62 }
  0x97   :  { %v2825_v9 = vcombine.high %v3475_v42, %v532_v31  ;;  %v2827_v41 = vcombine.high %v536_v37, %v3507_v55  ;;  %v541_v52 = vcombine.low %v150_v5, %v154_v17  ;;  %v2824_v51 = vcombine.low %v421_v25, %v482_v18  ;;  %3039 = vmatprep.subr.bf16.mxu0 %v3087_v28 }
  0x98   :  { %v2829_v29 = vcombine.high %v3538_v48, %v534_v44  ;;  %v2831_v10 = vcombine.high %v538_v40, %v3510_v34  ;;  %v2826_v24 = vcombine.low %v496_v22, %v533_v12  ;;  %v2828_v33 = vcombine.low %v537_v35, %v489_v53 }
  0x99   :  { %v555_v23 = vrot.slane %v541_v52, %v3453_v38  ;;  %v777_v42 = vrot.slane %v2822_v21, %v3453_v38  ;;  %v791_v55 = vrot.slane %v2824_v51, %v3453_v38  ;;  %v2830_v54 = vcombine.low %v503_v27, %v535_v61 }
  0x9a   :  { %v805_v56 = vrot.slane %v2826_v24, %v3453_v38  ;;  %v819_v45 = vrot.slane %v2828_v33, %v3453_v38  ;;  %v798_v47 = vrot.slane %v2825_v9, %v3453_v38  ;;  %v812_v48 = vrot.slane %v2827_v41, %v3453_v38  ;;  %3041 = vmatpush3.bf16.msra.mxu0 %v3040_v0 }
  0x9b   :  { %v563_v34 = vcombine.low %v548_v32, %v555_v23  ;;  %v564_v62 = vcombine.high %v548_v32, %v555_v23  ;;  %v828_v58 = vcombine.high %v777_v42, %v791_v55  ;;  %v827_v63 = vcombine.low %v777_v42, %v791_v55  ;;  %3042 = vmatprep.subr.bf16.mxu0 %v3087_v28 }
  0x9c   :  { %v831_v57 = vcombine.high %v805_v56, %v819_v45  ;;  %v830_v15 = vcombine.low %v805_v56, %v819_v45  ;;  %v892_v43 = vrot.slane %v2830_v54, %v3453_v38  ;;  %v826_v11 = vrot.slane %v2829_v29, %v3453_v38 }
  0x9d   :  { %v572_v46 = vrot.slane %v563_v34, %v3453_v38  ;;  %v579_v13 = vrot.slane %v564_v62, %v3453_v38  ;;  %v853_v14 = vrot.slane %v828_v58, %v3453_v38  ;;  %v839_v4 = vrot.slane %v827_v63, %v3453_v38  ;;  %v1974_v34 = vld [vmem:[%s4125_s3 + $0x20] sm:$0xff]  ;;  %v1975_v62 = vld [vmem:[%s4125_s3 + $0x28] sm:$0xff]  ;;  %v1976_v63 = vld [vmem:[%s4125_s3 + $0x30] sm:$0xff] }
  0x9e   :  { %v874_v5 = vrot.slane %v831_v57, %v3453_v38  ;;  %v860_v59 = vrot.slane %v830_v15, %v3453_v38  ;;  %v829_v60 = vcombine.low %v3565_v3, %v798_v47  ;;  %v832_v0 = vcombine.low %v812_v48, %v826_v11  ;;  %3044 = vmatpush3.bf16.msra.mxu0 %v3043_v1  ;;  %v1973_v47 = vld [vmem:[%s4125_s3 + $0x18] sm:$0xff]  ;;  %v1978_v11 = vld [vmem:[%s4125_s3 + $0x40] sm:$0xff] }
  0x9f   :  { %v594_v25 = vcombine.low %v572_v46, %v3499_v26  ;;  %v595_v21 = vcombine.high %v572_v46, %v3499_v26  ;;  %v596_v18 = vcombine.low %v579_v13, %v3544_v50  ;;  %v2832_v22 = vcombine.low %v539_v16, %v572_v46  ;;  %v1977_v57 = vld [vmem:[%s4125_s3 + $0x38] sm:$0xff]  ;;  %v1979_v46 = vld [vmem:[%s4125_s3 + $0x48] sm:$0xff] }
  0xa0   :  { %v878_v7 = vcombine.low %v853_v14, %v874_v5  ;;  %v879_v53 = vcombine.high %v853_v14, %v874_v5  ;;  %v875_v27 = vcombine.low %v839_v4, %v860_v59  ;;  %v876_v32 = vcombine.high %v839_v4, %v860_v59  ;;  %v1980_v4 = vld [vmem:[%s4125_s3 + $0x50] sm:$0xff]  ;;  %v1981_v5 = vld [vmem:[%s4125_s3 + $0x58] sm:$0xff] }
  0xa1   :  { %v2833_v17 = vcombine.high %v3541_v49, %v594_v25  ;;  %v2834_v31 = vcombine.low %v579_v13, %v595_v21  ;;  %v2835_v3 = vcombine.high %v596_v18, %v3499_v26  ;;  %v906_v12 = vrot.slane %v2832_v22, %v3453_v38  ;;  %v1982_v25 = vld [vmem:[%s4125_s3 + $0x60] sm:$0xff]  ;;  %v1983_v21 = vld [vmem:[%s4125_s3 + $0x68] sm:$0xff] }
  0xa2   :  { %1191 = vmatprep.mubr.f32.mxu0 %v878_v7  ;;  %1271 = vmatprep.mubr.f32.mxu1 %v879_v53  ;;  %v715_v50 = vcombine.low %v3594_v30, %v3599_v39  ;;  %v846_v37 = vrot.slane %v829_v60, %v3453_v38  ;;  %v867_v6 = vrot.slane %v832_v0, %v3453_v38  ;;  %v3090_v56 = vmov 0.0  }
  0xa3   :  { %1192 = vmatmul.mubr.f32.gmra.mrb[2].mxu0 %v875_v27  ;;  %1272 = vmatmul.mubr.f32.gmra.mrb[2].mxu1 %v876_v32  ;;  %v920_v19 = vrot.slane %v2834_v31, %v3453_v38  ;;  %v929_v1 = vcombine.high %v892_v43, %v906_v12  ;;  %v928_v49 = vcombine.low %v892_v43, %v906_v12  ;;  %v2813_v43 = vld [vmem:[%s4126_s2] ss:$0 sm:$0xff] }
  0xa4   :  { %v877_v35 = vcombine.low %v846_v37, %v867_v6  ;;  %v899_v26 = vrot.slane %v2831_v10, %v3453_v38  ;;  %v913_v44 = vrot.slane %v2833_v17, %v3453_v38  ;;  %v927_v61 = vrot.slane %v2835_v3, %v3453_v38 }
  0xa5   :  { %v931_v40 = vcombine.high %v920_v19, %v920_v19  ;;  %v938_v30 = vrot.slane %v928_v49, %v3453_v38  ;;  %v959_v39 = vrot.slane %v920_v19, %v3453_v38  ;;  %v952_v9 = vrot.slane %v929_v1, %v3453_v38 }
  0xa6   :  { %v930_v16 = vcombine.low %v899_v26, %v913_v44  ;;  %v729_v29 = vrot.slane %v712_v8, %v3453_v38  ;;  %v750_v10 = vrot.slane %v715_v50, %v3453_v38  ;;  %v966_v33 = vrot.slane %v927_v61, %v3453_v38  ;;  %v1972_v8 = vld [vmem:[%s4125_s3 + $0x10] sm:$0xff] }
  0xa7   :  { %v973_v41 = vrot.slane %v931_v40, %v3453_v38  ;;  %v974_v52 = vcombine.low %v938_v30, %v959_v39  ;;  %v975_v51 = vcombine.high %v938_v30, %v959_v39  ;;  %v3046_v45 = vpack.c.bf16 %v1971_v2, %v1970_v20 }
  0xa8   :  { %v945_v24 = vrot.slane %v930_v16, %v3453_v38  ;;  %v760_v54 = vcombine.low %v729_v29, %v750_v10  ;;  %v3049_v48 = vpack.c.bf16 %v1973_v47, %v1972_v8  ;;  %v3052_v58 = vpack.c.bf16 %v1975_v62, %v1974_v34 }
  0xa9   :  { %v977_v23 = vcombine.low %v952_v9, %v973_v41  ;;  %v978_v42 = vcombine.high %v952_v9, %v973_v41  ;;  %3047 = vmatpush1.bf16.msra.mxu1 %v3046_v45  ;;  %v3055_v15 = vpack.c.bf16 %v1977_v57, %v1976_v63  ;;  %v597_v13 = vcombine.high %v2813_v43, %v2813_v43 }
  0xaa   :  { %v976_v55 = vcombine.low %v945_v24, %v966_v33  ;;  %3048 = vmatprep.subr.bf16.mxu1 %v3087_v28  ;;  %v3058_v14 = vpack.c.bf16 %v1979_v46, %v1978_v11  ;;  %v604_v59 = vrot.slane %v2813_v43, %v3453_v38  ;;  %v3061_v0 = vpack.c.bf16 %v1981_v5, %v1980_v4 }
  0xab   :  { %1196 = vmatprep.mubr.f32.mxu0 %v977_v23  ;;  %1276 = vmatprep.mubr.f32.mxu1 %v978_v42  ;;  %v611_v60 = vrot.slane %v597_v13, %v3453_v38  ;;  %v3064_v7 = vpack.c.bf16 %v1983_v21, %v1982_v25 }
  0xac   :  { %1197 = vmatmul.mubr.f32.gmra.mrb[4].mxu0 %v974_v52  ;;  %1277 = vmatmul.mubr.f32.gmra.mrb[4].mxu1 %v975_v51  ;;  %v612_v18 = vcombine.high %v604_v59, %v604_v59  ;;  %v620_v53 = vrot.slane %v604_v59, %v3453_v38 }
  0xad   :  { %2960 = vmatprep.mubr.msk.f32.mxu0 %vm3089_vm3, %v3090_v56  ;;  %3050 = vmatpush1.bf16.msra.mxu1 %v3049_v48  ;;  %v613_v22 = vcombine.high %v611_v60, %v611_v60  ;;  %v627_v27 = vrot.slane %v611_v60, %v3453_v38 }
  0xae   :  { %3051 = vmatprep.subr.bf16.mxu1 %v3087_v28  ;;  %v634_v32 = vrot.slane %v612_v18, %v3453_v38  ;;  %v642_v61 = vcombine.high %v620_v53, %v620_v53 }
  0xaf   :  { %v641_v17 = vrot.slane %v613_v22, %v3453_v38 }
  0xb0   :  { %2961 = vmatmul.mubr.msk.f32.vlgmr.msra.gmra.mrb[6].mxu0 %vm138_vm2, %v760_v54  ;;  %v991_v31 = vcombine.low %v620_v53, %v634_v32  ;;  %v2836_v3 = vcombine.high %v620_v53, %v634_v32  ;;  %v644_v40 = vcombine.high %v634_v32, %v634_v32  ;;  %v1040_v51 = vcombine.low %v642_v61, %v620_v53 }
  0xb1   :  { %2963 = vmatprep.mubr.msk.f32.mxu0 %vm3089_vm3, %v3090_v56  ;;  %3053 = vmatpush1.bf16.msra.mxu1 %v3052_v58  ;;  %v993_v12 = vcombine.low %v627_v27, %v641_v17  ;;  %v2837_v50 = vcombine.high %v627_v27, %v641_v17  ;;  %v1041_v29 = vcombine.low %v634_v32, %v642_v61 }
  0xb2   :  { %3054 = vmatprep.subr.bf16.mxu1 %v3087_v28  ;;  %v1001_v37 = vrot.slane %v991_v31, %v3453_v38  ;;  %v1008_v6 = vrot.slane %v2836_v3, %v3453_v38  ;;  %v1042_v10 = vcombine.low %v644_v40, %v627_v27  ;;  %v1049_v23 = vrot.slane %v1040_v51, %v3453_v38 }
  0xb3   :  { %v1015_v19 = vrot.slane %v993_v12, %v3453_v38  ;;  %v1022_v1 = vrot.slane %v2837_v50, %v3453_v38  ;;  %v1056_v42 = vrot.slane %v1041_v29, %v3453_v38  ;;  %v645_v20 = vcombine.high %v641_v17, %v641_v17 }
  0xb4   :  { %2964 = vmatmul.mubr.msk.f32.gmra.mrb[8].mxu0 %vm138_vm2, %v877_v35  ;;  %v1023_v49 = vcombine.low %v1001_v37, %v1008_v6  ;;  %v1064_v2 = vcombine.low %v1001_v37, %v1049_v23 }
  0xb5   :  { %2966 = vmatprep.mubr.msk.f32.mxu0 %vm3089_vm3, %v3090_v56  ;;  %3056 = vmatpush1.bf16.msra.mxu1 %v3055_v15  ;;  %v1024_v35 = vcombine.low %v1015_v19, %v1022_v1  ;;  %v643_v56 = vcombine.high %v627_v27, %v627_v27  ;;  %v1082_v47 = vcombine.low %v645_v20, %v620_v53 }
  0xb6   :  { %3057 = vmatprep.subr.bf16.mxu1 %v3087_v28  ;;  %v1031_v26 = vrot.slane %v1023_v49, %v3453_v38  ;;  %v1072_v48 = vrot.slane %v1064_v2, %v3453_v38  ;;  %v1111_v59 = vrot.slane %v1056_v42, %v3453_v38 }
  0xb7   :  { %v1038_v44 = vrot.slane %v1024_v35, %v3453_v38  ;;  %v1081_v45 = vcombine.low %v641_v17, %v643_v56  ;;  %v1096_v58 = vrot.slane %v1082_v47, %v3453_v38 }
  0xb8   :  { %2967 = vmatmul.mubr.msk.f32.gmra.mrb[10].mxu0 %vm138_vm2, %v976_v55  ;;  %v1063_v55 = vrot.slane %v1042_v10, %v3453_v38 }
  0xb9   :  { %3059 = vmatpush1.bf16.msra.mxu1 %v3058_v14  ;;  %v1039_v39 = vcombine.low %v1031_v26, %v1038_v44  ;;  %v1089_v62 = vrot.slane %v1081_v45, %v3453_v38 }
  0xba   :  { %3060 = vmatprep.subr.bf16.mxu1 %v3087_v28  ;;  %v1065_v8 = vcombine.low %v1056_v42, %v1063_v55 }
  0xbb   :  { %v1097_v46 = vcombine.low %v1089_v62, %v1096_v58 }
  0xbc   :  { %v1079_v34 = vrot.slane %v1065_v8, %v3453_v38 }
  0xbd   :  { %3062 = vmatpush1.bf16.msra.mxu1 %v3061_v0  ;;  %v1104_v5 = vrot.slane %v1097_v46, %v3453_v38 }
  0xbe   :  { %3063 = vmatprep.subr.bf16.mxu1 %v3087_v28  ;;  %v1080_v15 = vcombine.low %v1072_v48, %v1079_v34 }
  0xbf   :  { %v1112_v21 = vcombine.low %v1104_v5, %v1111_v59 }
  0xc1   :  { %3065 = vmatpush1.bf16.msra.mxu1 %v3064_v7 }
  0xc2   :  { %3066 = vmatprep.subr.bf16.mxu1 %v3087_v28 }
 0x163   :  { %v2883_v30 = vpop.f32.mrb[0].mxu0 }
 0x164   :  { %v2924_v16 = vpop.f32.mrb[0].mxu1  ;;  %v2884_v9 = vpop.f32.mrb[1].mxu0 }
 0x165   :  { %v2885_v41 = vadd.f32 %v2884_v9, %v2883_v30  ;;  %v2925_v52 = vpop.f32.mrb[1].mxu1 }
 0x166   :  { %v2926_v24 = vadd.f32 %v2925_v52, %v2924_v16 }
 0x167   :  { %v1189_v33 = vadd.f32 %v2885_v41, %v1039_v39 }
 0x169   :  { %v1269_v54 = vadd.f32 %v2926_v24, %v1189_v33 }
 0x176   :  { %v2886_v63 = vpop.f32.mrb[2].mxu0  ;;  %v2927_v57 = vpop.f32.mrb[2].mxu1 }
 0x177   :  { %v2887_v43 = vpop.f32.mrb[3].mxu0  ;;  %v2928_v11 = vpop.f32.mrb[3].mxu1 }
 0x178   :  { %v2888_v13 = vadd.f32 %v2887_v43, %v2886_v63  ;;  %v2929_v14 = vadd.f32 %v2928_v11, %v2927_v57 }
 0x17a   :  { %v1194_v4 = vadd.f32 %v2888_v13, %v1080_v15 }
 0x17c   :  { %v1274_v60 = vadd.f32 %v2929_v14, %v1194_v4 }
 0x17f   :  { %v2889_v0 = vpop.f32.mrb[4].mxu0  ;;  %v2930_v25 = vpop.f32.mrb[4].mxu1 }
 0x180   :  { %v2890_v18 = vpop.f32.mrb[5].mxu0  ;;  %v2931_v22 = vpop.f32.mrb[5].mxu1 }
 0x181   :  { %v2891_v7 = vadd.f32 %v2890_v18, %v2889_v0  ;;  %v2932_v53 = vadd.f32 %v2931_v22, %v2930_v25 }
 0x183   :  { %v1199_v27 = vadd.f32 %v2891_v7, %v1112_v21  ;;  %v1348_v32 = vpop.f32.mrb[6].mxu0 }
 0x184   :  { %v1349_v17 = vadd.f32 %v1348_v32, %v1269_v54  ;;  %v2962_v31 = vpop.f32.mrb[7].mxu0 }
 0x185   :  { %v1279_v3 = vadd.f32 %v2932_v53, %v1199_v27 }
 0x186   :  { %v1365_v12 = vcombine.high %v1349_v17, %v1349_v17  ;;  %v1372_v50 = vrot.slane %v1349_v17, %v3453_v38 }
 0x187   :  { %v1353_v37 = vpop.f32.mrb[8].mxu0 }
 0x188   :  { %v1379_v6 = vrot.slane %v1365_v12, %v3453_v38  ;;  %v1380_v19 = vcombine.high %v1372_v50, %v1372_v50  ;;  %v1388_v1 = vrot.slane %v1372_v50, %v3453_v38  ;;  %v1354_v49 = vadd.f32 %v1353_v37, %v1274_v60  ;;  %v2965_v35 = vpop.f32.mrb[9].mxu0 }
 0x18a   :  { %v1381_v26 = vcombine.high %v1379_v6, %v1379_v6  ;;  %v3797_v44 = vrot.slane %v1379_v6, %v3453_v38  ;;  %v1402_v61 = vrot.slane %v1380_v19, %v3453_v38  ;;  %v1410_v40 = vcombine.high %v1388_v1, %v1388_v1 }
 0x18b   :  { %v1554_v30 = vmul.f32 0.1, %v1388_v1  ;;  %v1414_v39 = vcombine.high %v1354_v49, %v1354_v49  ;;  %v1421_v16 = vrot.slane %v1354_v49, %v3453_v38  ;;  %v1358_v9 = vpop.f32.mrb[10].mxu0  ;;  %vm1532_vm4 = vcmp.gt.f32.partialorder %v1388_v1, 0.0 }
 0x18c   :  { %v1409_v41 = vrot.slane %v1381_v26, %v3453_v38  ;;  %v2968_v52 = vpop.f32.mrb[11].mxu0  ;;  %v1411_v51 = vcombine.high %v3797_v44, %v3797_v44  ;;  %v1412_v29 = vcombine.high %v1402_v61, %v1402_v61  ;;  %vm1533_vm5 = vcmp.gt.f32.partialorder %v1402_v61, 0.0 }
 0x18d   :  { %v1555_v10 = vmul.f32 0.1, %v1402_v61  ;;  %v1556_v24 = vmul.f32 0.1, %v1410_v40  ;;  %v1428_v33 = vrot.slane %v1414_v39, %v3453_v38  ;;  %vm1536_vm6 = vcmp.gt.f32.partialorder %v3797_v44, 0.0 }
 0x18e   :  { %v3806_v23 = vsel %vm1532_vm4, %v1388_v1, %v1554_v30  ;;  %v1429_v42 = vcombine.high %v1421_v16, %v1421_v16  ;;  %v3809_v55 = vrot.slane %v1421_v16, %v3453_v38  ;;  %v1359_v54 = vadd.f32 %v1358_v9, %v1279_v3 }
 0x18f   :  { %v1413_v56 = vcombine.high %v1409_v41, %v1409_v41  ;;  %v1558_v20 = vmul.f32 0.1, %v3797_v44  ;;  %v1430_v2 = vcombine.high %v1428_v33, %v1428_v33  ;;  %v3813_v8 = vrot.slane %v1428_v33, %v3453_v38 }
 0x190   :  { %v1451_v45 = vrot.slane %v1429_v42, %v3453_v38  ;;  %vm1540_vm7 = vcmp.gt.f32.partialorder %v3809_v55, 0.0  ;;  %v1562_v47 = vmul.f32 0.1, %v3809_v55  ;;  %v1463_v48 = vcombine.high %v1359_v54, %v1359_v54 }
 0x191   :  { %v1559_v34 = vmul.f32 0.1, %v1409_v41  ;;  %v3819_v62 = vrot.slane %v1430_v2, %v3453_v38  ;;  %vm1534_vm8 = vcmp.gt.f32.partialorder %v1410_v40, 0.0  ;;  %vm1535_vm9 = vcmp.gt.f32.partialorder %v1412_v29, 0.0 }
 0x192   :  { %v3821_v58 = vcombine.high %v1451_v45, %v1451_v45  ;;  %v1470_v63 = vrot.slane %v1359_v54, %v3453_v38  ;;  %v3825_v57 = vrot.slane %v1463_v48, %v3453_v38  ;;  %vm1537_vm10 = vcmp.gt.f32.partialorder %v1409_v41, 0.0 }
 0x193   :  { %v3829_v15 = vcombine.high %v3813_v8, %v3813_v8  ;;  %v3833_v43 = vcombine.high %v3819_v62, %v3819_v62  ;;  %v1566_v11 = vmul.f32 0.1, %v3813_v8  ;;  %v3837_v46 = vsel %vm1540_vm7, %v3809_v55, %v1562_v47 }
 0x194   :  { %v1567_v13 = vmul.f32 0.1, %v3819_v62  ;;  %v1478_v14 = vcombine.high %v1470_v63, %v1470_v63  ;;  %v1486_v4 = vrot.slane %v1470_v63, %v3453_v38  ;;  %vm1538_vm11 = vcmp.gt.f32.partialorder %v1411_v51, 0.0 }
 0x195   :  { %v1565_v5 = vmul.f32 0.1, %v3821_v58  ;;  %v3844_v59 = vrot.slane %v3825_v57, %v3453_v38  ;;  %vm1539_vm12 = vcmp.gt.f32.partialorder %v1413_v56, 0.0  ;;  %v1557_v60 = vmul.f32 0.1, %v1412_v29 }
 0x196   :  { %v1500_v0 = vrot.slane %v1478_v14, %v3453_v38  ;;  %v1508_v25 = vcombine.high %v1486_v4, %v1486_v4  ;;  %v1560_v21 = vmul.f32 0.1, %v1411_v51  ;;  %v1561_v18 = vmul.f32 0.1, %v1413_v56 }
 0x197   :  { %vm1544_vm13 = vcmp.gt.f32.partialorder %v3813_v8, 0.0  ;;  %vm1548_vm14 = vcmp.gt.f32.partialorder %v1486_v4, 0.0  ;;  %v1570_v22 = vmul.f32 0.1, %v1486_v4  ;;  %v3849_v7 = vsel %vm1533_vm5, %v1402_v61, %v1555_v10 }
 0x198   :  { %v3852_v53 = vsel %vm1534_vm8, %v1410_v40, %v1556_v24  ;;  %v1509_v27 = vcombine.high %v1500_v0, %v1500_v0  ;;  %vm1549_vm15 = vcmp.gt.f32.partialorder %v1500_v0, 0.0  ;;  %v1571_v32 = vmul.f32 0.1, %v1500_v0 }
 0x199   :  { %v1574_v17 = vmul.f32 0.1, %v3844_v59  ;;  %v1572_v31 = vmul.f32 0.1, %v1508_v25  ;;  %v3856_v3 = vsel %vm1535_vm9, %v1412_v29, %v1557_v60  ;;  %v3861_v12 = vsel %vm1536_vm6, %v3797_v44, %v1558_v20 }
 0x19a   :  { %v3864_v50 = vsel %vm1537_vm10, %v1409_v41, %v1559_v34  ;;  %v3867_v37 = vsel %vm1538_vm11, %v1411_v51, %v1560_v21  ;;  %v3870_v6 = vsel %vm1539_vm12, %v1413_v56, %v1561_v18  ;;  %v1616_v19 = vcombine.low %v3806_v23, %v3849_v7 }
 0x19b   :  { %v1748_v1 = vcombine.low %v3849_v7, %v3852_v53  ;;  %v1749_v49 = vcombine.low %v3856_v3, %v3861_v12  ;;  %v1750_v35 = vcombine.low %v3864_v50, %v3867_v37  ;;  %v1751_v26 = vcombine.low %v3870_v6, %v3837_v46  ;;  %v1984_v7 = vld [vmem:[%s4125_s3 + $0x70] sm:$0xff] }
 0x19c   :  { %vm1541_vm0 = vcmp.gt.f32.partialorder %v1451_v45, 0.0  ;;  %v1563_v61 = vmul.f32 0.1, %v1451_v45  ;;  %vm1543_vm1 = vcmp.gt.f32.partialorder %v3821_v58, 0.0  ;;  %vm1545_vm3 = vcmp.gt.f32.partialorder %v3819_v62, 0.0 }
 0x19d   :  { %v1758_v44 = vrot.slane %v1748_v1, %v3453_v38  ;;  %v1765_v40 = vrot.slane %v1749_v49, %v3453_v38  ;;  %v1772_v30 = vrot.slane %v1750_v35, %v3453_v38  ;;  %v1779_v39 = vrot.slane %v1751_v26, %v3453_v38 }
 0x19e   :  { %vm1546_vm4 = vcmp.gt.f32.partialorder %v3829_v15, 0.0  ;;  %v1585_v16 = vsel %vm1541_vm0, %v1451_v45, %v1563_v61  ;;  %vm1547_vm5 = vcmp.gt.f32.partialorder %v3833_v43, 0.0  ;;  %vm1550_vm6 = vcmp.gt.f32.partialorder %v1508_v25, 0.0 }
 0x19f   :  { %vm1551_vm7 = vcmp.gt.f32.partialorder %v1509_v27, 0.0  ;;  %v1780_v9 = vcombine.low %v1758_v44, %v1765_v40  ;;  %v1781_v41 = vcombine.low %v1772_v30, %v1779_v39  ;;  %v1803_v52 = vrot.slane %v1585_v16, %v3453_v38 }
 0x1a0   :  { %v1888_v51 = vcombine.low %v3837_v46, %v1585_v16  ;;  %v3893_v29 = vsel %vm1548_vm14, %v1486_v4, %v1570_v22  ;;  %v1568_v10 = vmul.f32 0.1, %v3829_v15  ;;  %v1569_v24 = vmul.f32 0.1, %v3833_v43 }
 0x1a1   :  { %v1573_v33 = vmul.f32 0.1, %v1509_v27  ;;  %v1788_v23 = vrot.slane %v1780_v9, %v3453_v38  ;;  %v1795_v42 = vrot.slane %v1781_v41, %v3453_v38  ;;  %v1810_v54 = vrot.slane %v1803_v52, %v3453_v38 }
 0x1a2   :  { %v1587_v56 = vsel %vm1543_vm1, %v3821_v58, %v1565_v5  ;;  %v1588_v20 = vsel %vm1544_vm13, %v3813_v8, %v1566_v11  ;;  %v1589_v2 = vsel %vm1545_vm3, %v3819_v62, %v1567_v13  ;;  %v1590_v45 = vsel %vm1546_vm4, %v3829_v15, %v1568_v10 }
 0x1a3   :  { %v1591_v47 = vsel %vm1547_vm5, %v3833_v43, %v1569_v24  ;;  %v1796_v48 = vcombine.low %v1788_v23, %v1795_v42  ;;  %v1593_v34 = vsel %vm1549_vm15, %v1500_v0, %v1571_v32  ;;  %v1594_v58 = vsel %vm1550_vm6, %v1508_v25, %v1572_v31 }
 0x1a4   :  { %v3918_v63 = vsel %vm1551_vm7, %v1509_v27, %v1573_v33  ;;  %v1679_v8 = vcombine.low %v1587_v56, %v1588_v20  ;;  %v1811_v11 = vcombine.low %v1588_v20, %v1589_v2  ;;  %v1812_v14 = vcombine.low %v1590_v45, %v1591_v47  ;;  %v1988_v56 = vld [vmem:[%s4125_s3 + $0x90] sm:$0xff] }
 0x1a5   :  { %v1813_v62 = vcombine.low %v3893_v29, %v1593_v34  ;;  %1874 = vrot.lane.b32.xlu0 %v1796_v48, %s3086_s24  ;;  %v1814_v15 = vcombine.low %v1594_v58, %v3918_v63  ;;  %vm1552_vm8 = vcmp.gt.f32.partialorder %v3844_v59, 0.0  ;;  %v1617_v43 = vcombine.low %v3852_v53, %v3856_v3  ;;  %v1985_v53 = vld [vmem:[%s4125_s3 + $0x78] sm:$0xff]  ;;  %v1991_v48 = vld [vmem:[%s4125_s3 + $0xa8] sm:$0xff] }
 0x1a6   :  { %v1618_v13 = vcombine.low %v3861_v12, %v3864_v50  ;;  %v1895_v4 = vrot.slane %v1888_v51, %v3453_v38  ;;  %v1821_v5 = vrot.slane %v1811_v11, %v3453_v38  ;;  %v1828_v60 = vrot.slane %v1812_v14, %v3453_v38  ;;  %v1986_v12 = vld [vmem:[%s4125_s3 + $0x80] sm:$0xff]  ;;  %v1987_v50 = vld [vmem:[%s4125_s3 + $0x88] sm:$0xff] }
 0x1a7   :  { %v1596_v0 = vsel %vm1552_vm8, %v3844_v59, %v1574_v17  ;;  %v1835_v25 = vrot.slane %v1813_v62, %v3453_v38  ;;  %v1842_v21 = vrot.slane %v1814_v15, %v3453_v38  ;;  %v1619_v22 = vcombine.low %v3867_v37, %v3870_v6 }
 0x1a8   :  { %v1927_v18 = vcombine.low %v3918_v63, %v1596_v0  ;;  %v1843_v27 = vcombine.low %v1821_v5, %v1828_v60  ;;  %v1626_v59 = vrot.slane %v1616_v19, %v3453_v38  ;;  %v1633_v32 = vrot.slane %v1617_v43, %v3453_v38  ;;  %v1993_v5 = vld [vmem:[%s4125_s3 + $0xb8] sm:$0xff] }
 0x1a9   :  { %v1640_v17 = vrot.slane %v1618_v13, %v3453_v38  ;;  %1876 = vrot.lane.b32.xlu0 %v1810_v54, %s3086_s24  ;;  %v1844_v31 = vcombine.low %v1835_v25, %v1842_v21  ;;  %v1647_v3 = vrot.slane %v1619_v22, %v3453_v38  ;;  %v3067_v19 = vpack.c.bf16 %v1985_v53, %v1984_v7 }
 0x1aa   :  { %v1648_v37 = vcombine.low %v1626_v59, %v1633_v32  ;;  %v1851_v1 = vrot.slane %v1843_v27, %v3453_v38  ;;  %v1866_v44 = vrot.slane %v1596_v0, %v3453_v38  ;;  %v3070_v40 = vpack.c.bf16 %v1987_v50, %v1986_v12 }
 0x1ab   :  { %v1896_v6 = vcombine.low %v1633_v32, %v1640_v17  ;;  %v1858_v49 = vrot.slane %v1844_v31, %v3453_v38  ;;  %v1649_v35 = vcombine.low %v1640_v17, %v1647_v3  ;;  %v1897_v26 = vcombine.low %v1647_v3, %v1895_v4  ;;  %3068 = vmatpush1.bf16.msra.mxu1 %v3067_v19  ;;  %v1992_v4 = vld [vmem:[%s4125_s3 + $0xb0] sm:$0xff] }
 0x1ac   :  { %v1656_v61 = vrot.slane %v1648_v37, %v3453_v38  ;;  %3069 = vmatprep.subr.bf16.mxu1 %v3087_v28  ;;  %v1934_v41 = vrot.slane %v1927_v18, %v3453_v38  ;;  %v1680_v52 = vcombine.low %v1589_v2, %v1590_v45  ;;  %v1681_v51 = vcombine.low %v1591_v47, %v3893_v29  ;;  %v1989_v29 = vld [vmem:[%s4125_s3 + $0x98] sm:$0xff]  ;;  %v1990_v47 = vld [vmem:[%s4125_s3 + $0xa0] sm:$0xff] }
 0x1ad   :  { %v1859_v30 = vcombine.low %v1851_v1, %v1858_v49  ;;  %v1663_v39 = vrot.slane %v1649_v35, %v3453_v38  ;;  %v1904_v16 = vrot.slane %v1896_v6, %v3453_v38  ;;  %v1911_v9 = vrot.slane %v1897_v26, %v3453_v38 }
 0x1ae   :  { %v1682_v33 = vcombine.low %v1593_v34, %v1594_v58  ;;  %v1689_v23 = vrot.slane %v1679_v8, %v3453_v38  ;;  %v1696_v42 = vrot.slane %v1680_v52, %v3453_v38  ;;  %v1703_v54 = vrot.slane %v1681_v51, %v3453_v38 }
 0x1af   :  { %1878 = vrot.lane.b32.xlu1 %v1859_v30, %s3086_s24  ;;  %v1664_v10 = vcombine.low %v1656_v61, %v1663_v39  ;;  %v1912_v24 = vcombine.low %v1904_v16, %v1911_v9  ;;  %3071 = vmatpush1.bf16.msra.mxu1 %v3070_v40  ;;  %v1873_v20 = vrot.slane %v1866_v44, %v3453_v38  ;;  %vm2794_vm1 = vcmask 1040384  }
 0x1b0   :  { %v1710_v2 = vrot.slane %v1682_v33, %v3453_v38  ;;  %3072 = vmatprep.subr.bf16.mxu1 %v3087_v28  ;;  %v3073_v45 = vpack.c.bf16 %v1989_v29, %v1988_v56  ;;  %v1711_v34 = vcombine.low %v1689_v23, %v1696_v42  ;;  %v1935_v58 = vcombine.low %v1696_v42, %v1703_v54 }
 0x1b1   :  { %v3076_v14 = vpack.c.bf16 %v1991_v48, %v1990_v47  ;;  %v3079_v25 = vpack.c.bf16 %v1993_v5, %v1992_v4  ;;  %v1459_v21 = vcombine.high %v3809_v55, %v3809_v55  ;;  %v1479_v18 = vcombine.high %v3825_v57, %v3825_v57 }
 0x1b2   :  { %v1712_v8 = vcombine.low %v1703_v54, %v1710_v2  ;;  %v1936_v11 = vcombine.low %v1710_v2, %v1934_v41  ;;  %v1719_v62 = vrot.slane %v1711_v34, %v3453_v38  ;;  %v1943_v43 = vrot.slane %v1935_v58, %v3453_v38 }
 0x1b3   :  { %1880 = vrot.lane.b32.xlu1 %v1873_v20, %s3086_s24  ;;  %3074 = vmatpush1.bf16.msra.mxu1 %v3073_v45  ;;  %v1564_v22 = vmul.f32 0.1, %v1459_v21  ;;  %vm1542_vm9 = vcmp.gt.f32.partialorder %v1459_v21, 0.0  ;;  %v1507_v7 = vrot.slane %v1479_v18, %v3453_v38  ;;  %v1671_v27 = vrot.slane %v3837_v46, %v3453_v38 }
 0x1b4   :  { %v1726_v15 = vrot.slane %v1712_v8, %v3453_v38  ;;  %v1950_v13 = vrot.slane %v1936_v11, %v3453_v38  ;;  %3075 = vmatprep.subr.bf16.mxu1 %v3087_v28  ;;  %v1734_v35 = vrot.slane %v3918_v63, %v3453_v38  ;;  %vm2797_vm4 = vcmask 1041408  }
 0x1b5   :  { %v1586_v53 = vsel %vm1542_vm9, %v1459_v21, %v1564_v22  ;;  %v1575_v3 = vmul.f32 0.1, %v1507_v7  ;;  %v1678_v55 = vrot.slane %v1671_v27, %v3453_v38  ;;  %vm1553_vm10 = vcmp.gt.f32.partialorder %v1507_v7, 0.0 }
 0x1b6   :  { %v1727_v60 = vcombine.low %v1719_v62, %v1726_v15  ;;  %v1951_v0 = vcombine.low %v1943_v43, %v1950_v13  ;;  %vm2800_vm5 = vcmask 1042432   ;;  %vm2803_vm8 = vcmask 1043456  }
 0x1b7   :  { %3077 = vmatpush1.bf16.msra.mxu1 %v3076_v14  ;;  %v1597_v1 = vsel %vm1553_vm10, %v1507_v7, %v1575_v3 }
 0x1b8   :  { %3078 = vmatprep.subr.bf16.mxu1 %v3087_v28  ;;  %v1919_v28 = vrot.slane %v1586_v53, %v3453_v38  ;;  %v1958_v30 = vrot.slane %v1597_v1, %v3453_v38 }
 0x1ba   :  { %v1926_v37 = vrot.slane %v1919_v28, %v3453_v38  ;;  %v1965_v29 = vrot.slane %v1958_v30, %v3453_v38 }
 0x1bb   :  { %3080 = vmatpush1.bf16.msra.mxu1 %v3079_v25 }
 0x217   :  { %v1875_v59 = vpop.permute.xlu0 %1874 }
 0x218   :  { %v1966_v32 = vsel %vm138_vm2, %v1664_v10, %v1875_v59  ;;  %v1741_v10 = vrot.slane %v1734_v35, %v3453_v38 }
 0x219   :  { %v2842_v17 = vcombine.low %v1966_v32, %v1904_v16  ;;  %v2005_v31 = vcombine.high %v1966_v32, %v1912_v24 }
 0x21b   :  { %v2012_v57 = vrot.slane %v2842_v17, %v3453_v38  ;;  %v2019_v12 = vrot.slane %v2005_v31, %v3453_v38  ;;  %v1877_v50 = vpop.permute.xlu0 %1876 }
 0x21c   :  { %v1967_v46 = vsel %vm138_vm2, %v1678_v55, %v1877_v50 }
 0x21d   :  { %v2020_v6 = vcombine.high %v2012_v57, %v2012_v57  ;;  %v2021_v19 = vcombine.high %v2019_v12, %v2019_v12  ;;  %v2054_v49 = vcombine.low %v1967_v46, %v1926_v37  ;;  %v2028_v26 = vrot.slane %v2012_v57, %v3453_v38 }
 0x21e   :  { %v2035_v44 = vrot.slane %v2019_v12, %v3453_v38 }
 0x21f   :  { %v2042_v61 = vrot.slane %v2020_v6, %v3453_v38  ;;  %v2049_v40 = vrot.slane %v2021_v19, %v3453_v38  ;;  %v2061_v42 = vrot.slane %v2054_v49, %v3453_v38 }
 0x221   :  { %v2183_v39 = vcombine.low %v2028_v26, %v2042_v61  ;;  %v2844_v16 = vcombine.high %v2028_v26, %v2042_v61  ;;  %v2185_v9 = vcombine.low %v2035_v44, %v2049_v40  ;;  %v2845_v41 = vcombine.high %v2035_v44, %v2049_v40  ;;  %v1879_v52 = vpop.permute.xlu1 %1878 }
 0x222   :  { %v1968_v51 = vsel %vm138_vm2, %v1727_v60, %v1879_v52  ;;  %v2068_v60 = vrot.slane %v2061_v42, %v3453_v38  ;;  %v2841_v52 = vld [vmem:[%s4127_s4] ss:$0 sm:$0xff] }
 0x223   :  { %v2193_v63 = vrot.slane %v2183_v39, %v3453_v38  ;;  %v2200_v24 = vrot.slane %v2844_v16, %v3453_v38  ;;  %v2207_v33 = vrot.slane %v2185_v9, %v3453_v38  ;;  %v2214_v23 = vrot.slane %v2845_v41, %v3453_v38 }
 0x224   :  { %v2843_v54 = vcombine.low %v1968_v51, %v1943_v43  ;;  %v2070_v56 = vcombine.high %v1968_v51, %v1951_v0  ;;  %v2134_v51 = vcombine.high %v2841_v52, %v2841_v52 }
 0x225   :  { %v2215_v20 = vcombine.low %v2193_v63, %v2200_v24  ;;  %v2217_v2 = vcombine.low %v2207_v33, %v2214_v23  ;;  %v1881_v45 = vpop.permute.xlu1 %1880  ;;  %v2216_v47 = vcombine.high %v2193_v63, %v2200_v24  ;;  %v2218_v48 = vcombine.high %v2207_v33, %v2214_v23 }
 0x226   :  { %v2077_v34 = vrot.slane %v2843_v54, %v3453_v38  ;;  %v2084_v58 = vrot.slane %v2070_v56, %v3453_v38  ;;  %v1969_v8 = vsel %vm138_vm2, %v1741_v10, %v1881_v45  ;;  %v2141_v10 = vrot.slane %v2841_v52, %v3453_v38 }
 0x227   :  { %v2119_v11 = vcombine.low %v1969_v8, %v1965_v29  ;;  %v2232_v14 = vrot.slane %v2216_v47, %v3453_v38  ;;  %v2246_v62 = vrot.slane %v2218_v48, %v3453_v38  ;;  %v2225_v15 = vrot.slane %v2215_v20, %v3453_v38 }
 0x228   :  { %v2085_v43 = vcombine.high %v2077_v34, %v2077_v34  ;;  %v2086_v13 = vcombine.high %v2084_v58, %v2084_v58  ;;  %v2093_v4 = vrot.slane %v2077_v34, %v3453_v38  ;;  %v2100_v5 = vrot.slane %v2084_v58, %v3453_v38 }
 0x229   :  { %v2126_v0 = vrot.slane %v2119_v11, %v3453_v38  ;;  %v2248_v25 = vcombine.low %v2232_v14, %v2246_v62  ;;  %v2239_v21 = vrot.slane %v2217_v2, %v3453_v38  ;;  %v2148_v63 = vrot.slane %v2134_v51, %v3453_v38 }
 0x22a   :  { %v2107_v18 = vrot.slane %v2085_v43, %v3453_v38  ;;  %v2114_v22 = vrot.slane %v2086_v13, %v3453_v38  ;;  %v2115_v7 = vcombine.high %v2093_v4, %v2093_v4  ;;  %v2116_v53 = vcombine.high %v2100_v5, %v2100_v5 }
 0x22b   :  { %v2249_v27 = vcombine.low %v2068_v60, %v2093_v4  ;;  %v2133_v59 = vrot.slane %v2126_v0, %v3453_v38  ;;  %2848 = vmatprep.mubr.msk.f32.mxu1 %vm138_vm2, %v2248_v25  ;;  %v2247_v32 = vcombine.low %v2225_v15, %v2239_v21  ;;  %v2149_v24 = vcombine.high %v2141_v10, %v2141_v10 }
 0x22c   :  { %v2117_v28 = vcombine.high %v2107_v18, %v2107_v18  ;;  %v2250_v17 = vcombine.low %v2107_v18, %v2115_v7  ;;  %v2252_v31 = vcombine.low %v2114_v22, %v2116_v53  ;;  %v2118_v3 = vcombine.high %v2114_v22, %v2114_v22 }
 0x22d   :  { %2528 = vmatmul.mubr.f32.vlgmr.msra.gmra.mrb[6].mxu1 %v2247_v32  ;;  %v2259_v57 = vrot.slane %v2249_v27, %v3453_v38  ;;  %v2150_v33 = vcombine.high %v2148_v63, %v2148_v63  ;;  %v2157_v23 = vrot.slane %v2141_v10, %v3453_v38  ;;  %v2164_v42 = vrot.slane %v2148_v63, %v3453_v38 }
 0x22e   :  { %v2251_v55 = vcombine.low %v2117_v28, %v2100_v5  ;;  %v2266_v12 = vrot.slane %v2250_v17, %v3453_v38  ;;  %v2315_v50 = vcombine.low %v2118_v3, %v2133_v59  ;;  %v2280_v37 = vrot.slane %v2252_v31, %v3453_v38 }
 0x22f   :  { %v2171_v54 = vrot.slane %v2149_v24, %v3453_v38  ;;  %v2178_v56 = vrot.slane %v2150_v33, %v3453_v38  ;;  %v2179_v8 = vcombine.high %v2157_v23, %v2157_v23  ;;  %v2180_v11 = vcombine.high %v2164_v42, %v2164_v42 }
 0x230   :  { %v2273_v46 = vrot.slane %v2251_v55, %v3453_v38  ;;  %v2322_v6 = vrot.slane %v2315_v50, %v3453_v38  ;;  %v2282_v19 = vcombine.high %v2259_v57, %v2266_v12  ;;  %v2281_v1 = vcombine.low %v2259_v57, %v2266_v12 }
 0x231   :  { %v2341_v29 = vcombine.low %v2157_v23, %v2171_v54  ;;  %v2846_v20 = vcombine.high %v2157_v23, %v2171_v54  ;;  %v2343_v2 = vcombine.low %v2164_v42, %v2178_v56  ;;  %v2847_v45 = vcombine.high %v2164_v42, %v2178_v56 }
 0x232   :  { %v2284_v49 = vcombine.high %v2273_v46, %v2280_v37  ;;  %v2283_v35 = vcombine.low %v2273_v46, %v2280_v37  ;;  %v2298_v26 = vrot.slane %v2282_v19, %v3453_v38  ;;  %v2291_v61 = vrot.slane %v2281_v1, %v3453_v38 }
 0x233   :  { %v2323_v30 = vcombine.high %v2322_v6, %v2322_v6  ;;  %v2330_v41 = vrot.slane %v2322_v6, %v3453_v38  ;;  %v2351_v47 = vrot.slane %v2341_v29, %v3453_v38  ;;  %v2358_v48 = vrot.slane %v2846_v20, %v3453_v38 }
 0x234   :  { %v2312_v44 = vrot.slane %v2284_v49, %v3453_v38  ;;  %v2305_v40 = vrot.slane %v2283_v35, %v3453_v38  ;;  %v2365_v34 = vrot.slane %v2343_v2, %v3453_v38  ;;  %v2372_v58 = vrot.slane %v2847_v45, %v3453_v38 }
 0x235   :  { %v2337_v9 = vrot.slane %v2323_v30, %v3453_v38  ;;  %v2181_v14 = vcombine.high %v2171_v54, %v2171_v54  ;;  %v2373_v62 = vcombine.low %v2351_v47, %v2358_v48  ;;  %v2390_v43 = vcombine.low %v2157_v23, %v2157_v23 }
 0x236   :  { %v2314_v39 = vcombine.low %v2298_v26, %v2312_v44  ;;  %v2313_v16 = vcombine.low %v2291_v61, %v2305_v40  ;;  %v2374_v15 = vcombine.low %v2365_v34, %v2372_v58  ;;  %v2391_v13 = vcombine.low %v2171_v54, %v2179_v8 }
 0x237   :  { %v2392_v4 = vcombine.low %v2181_v14, %v2164_v42  ;;  %v2393_v5 = vcombine.low %v2178_v56, %v2180_v11  ;;  %v2381_v60 = vrot.slane %v2373_v62, %v3453_v38  ;;  %v2400_v25 = vrot.slane %v2390_v43, %v3453_v38 }
 0x238   :  { %2849 = vmatprep.mubr.msk.f32.mxu1 %vm138_vm2, %v2314_v39  ;;  %v2388_v0 = vrot.slane %v2374_v15, %v3453_v38  ;;  %v2407_v21 = vrot.slane %v2391_v13, %v3453_v38  ;;  %v2182_v53 = vcombine.high %v2178_v56, %v2178_v56  ;;  %v4081_v26 = vsub.s32 0, %v3449_v36 }
 0x239   :  { %2533 = vmatmul.mubr.f32.gmra.mrb[8].mxu1 %v2313_v16  ;;  %v2414_v18 = vrot.slane %v2392_v4, %v3453_v38  ;;  %v2421_v22 = vrot.slane %v2393_v5, %v3453_v38 }
 0x23a   :  { %2850 = vmatprep.mubr.msk.f32.mxu1 %vm138_vm2, %v2337_v9  ;;  %v2389_v7 = vcombine.low %v2381_v60, %v2388_v0  ;;  %v2422_v59 = vcombine.low %v2400_v25, %v2407_v21  ;;  %v2439_v31 = vcombine.low %v2182_v53, %v2157_v23 }
 0x23b   :  { %v2423_v32 = vcombine.low %v2414_v18, %v2421_v22 }
 0x23c   :  { %v2430_v57 = vrot.slane %v2422_v59, %v3453_v38  ;;  %v2446_v6 = vrot.slane %v2439_v31, %v3453_v38 }
 0x23d   :  { %2538 = vmatmul.mubr.f32.gmra.mrb[10].mxu1 %v2330_v41  ;;  %v2437_v12 = vrot.slane %v2423_v32, %v3453_v38 }
 0x23e   :  { %v2453_v39 = vrot.slane %v2446_v6, %v3453_v38 }
 0x23f   :  { %v2438_v44 = vcombine.low %v2430_v57, %v2437_v12 }
 0x300   :  { %v2529_v27 = vpop.f32.mrb[6].mxu1 }
 0x301   :  { %v2530_v28 = vadd.f32 %v2529_v27, %v2389_v7  ;;  %v2531_v17 = vpop.f32.mrb[7].mxu1 }
 0x303   :  { %v2546_v3 = vcombine.high %v2530_v28, %v2530_v28  ;;  %v2553_v55 = vrot.slane %v2530_v28, %v3453_v38 }
 0x305   :  { %v2560_v50 = vrot.slane %v2546_v3, %v3453_v38  ;;  %v2561_v37 = vcombine.high %v2553_v55, %v2553_v55  ;;  %v2569_v46 = vrot.slane %v2553_v55, %v3453_v38 }
 0x307   :  { %v2562_v19 = vcombine.high %v2560_v50, %v2560_v50  ;;  %v2576_v1 = vrot.slane %v2560_v50, %v3453_v38  ;;  %v2583_v49 = vrot.slane %v2561_v37, %v3453_v38  ;;  %v2591_v35 = vcombine.high %v2569_v46, %v2569_v46 }
 0x308   :  { %v2702_v10 = vmul.f32 0.1, %v2569_v46  ;;  %vm2684_vm0 = vcmp.gt.f32.partialorder %v2569_v46, 0.0 }
 0x309   :  { %v2590_v61 = vrot.slane %v2562_v19, %v3453_v38  ;;  %v2592_v40 = vcombine.high %v2576_v1, %v2576_v1  ;;  %v2593_v30 = vcombine.high %v2583_v49, %v2583_v49  ;;  %vm2685_vm2 = vcmp.gt.f32.partialorder %v2583_v49, 0.0 }
 0x30a   :  { %vm2686_vm11 = vcmp.gt.f32.partialorder %v2591_v35, 0.0  ;;  %v2703_v16 = vmul.f32 0.1, %v2583_v49  ;;  %v2704_v9 = vmul.f32 0.1, %v2591_v35  ;;  %vm2688_vm13 = vcmp.gt.f32.partialorder %v2576_v1, 0.0 }
 0x30b   :  { %vm2687_vm12 = vcmp.gt.f32.partialorder %v2593_v30, 0.0  ;;  %vm2689_vm14 = vcmp.gt.f32.partialorder %v2590_v61, 0.0  ;;  %vm2690_vm15 = vcmp.gt.f32.partialorder %v2592_v40, 0.0  ;;  %v2594_v41 = vcombine.high %v2590_v61, %v2590_v61 }
 0x30c   :  { %v2705_v52 = vmul.f32 0.1, %v2593_v30  ;;  %v2706_v51 = vmul.f32 0.1, %v2576_v1  ;;  %v2707_v36 = vmul.f32 0.1, %v2590_v61  ;;  %v2721_v24 = vsel %vm2685_vm2, %v2583_v49, %v2703_v16 }
 0x30d   :  { %v2708_v63 = vmul.f32 0.1, %v2592_v40  ;;  %v2722_v33 = vsel %vm2686_vm11, %v2591_v35, %v2704_v9  ;;  %v2534_v23 = vpop.f32.mrb[8].mxu1  ;;  %v2709_v58 = vmul.f32 0.1, %v2594_v41  ;;  %vm2691_vm3 = vcmp.gt.f32.partialorder %v2594_v41, 0.0 }
 0x30e   :  { %v2723_v42 = vsel %vm2687_vm12, %v2593_v30, %v2705_v52  ;;  %v2724_v54 = vsel %vm2688_vm13, %v2576_v1, %v2706_v51  ;;  %v2725_v56 = vsel %vm2689_vm14, %v2590_v61, %v2707_v36  ;;  %v2738_v29 = vmax.f32 %v2721_v24, %v2722_v33  ;;  %v2536_v20 = vpop.f32.mrb[9].mxu1 }
 0x30f   :  { %v2726_v2 = vsel %vm2690_vm15, %v2592_v40, %v2708_v63  ;;  %v2740_v45 = vmax.f32 %v2723_v42, %v2724_v54  ;;  %v2535_v47 = vadd.f32 %v2534_v23, %v2438_v44  ;;  %v2720_v15 = vsel %vm2684_vm0, %v2569_v46, %v2702_v10 }
 0x310   :  { %v2742_v48 = vmax.f32 %v2725_v56, %v2726_v2  ;;  %v2751_v34 = vrot.slane %v2738_v29, %v4081_v26  ;;  %v2539_v8 = vpop.f32.mrb[10].mxu1  ;;  %v2727_v21 = vsel %vm2691_vm3, %v2594_v41, %v2709_v58  ;;  %vm2806_vm2 = vcmask 258048  }
 0x311   :  { %v2595_v11 = vcombine.high %v2535_v47, %v2535_v47  ;;  %v2602_v14 = vrot.slane %v2535_v47, %v3453_v38  ;;  %v2541_v62 = vpop.f32.mrb[11].mxu1  ;;  %v2763_v43 = vrot.slane %v2740_v45, %v4081_v26  ;;  %v2540_v13 = vadd.f32 %v2539_v8, %v2453_v39 }
 0x312   :  { %v2795_v4 = vsel %vm2794_vm1, %v2720_v15, %v2751_v34  ;;  %v2775_v25 = vrot.slane %v2742_v48, %v4081_v26 }
 0x313   :  { %v2609_v5 = vrot.slane %v2595_v11, %v3453_v38  ;;  %v2610_v60 = vcombine.high %v2602_v14, %v2602_v14  ;;  %v2618_v0 = vrot.slane %v2602_v14, %v3453_v38  ;;  %v2650_v18 = vrot.slane %v2540_v13, %v3453_v38 }
 0x314   :  { %v2798_v59 = vsel %vm2797_vm4, %v2795_v4, %v2763_v43 }
 0x315   :  { %v2611_v22 = vcombine.high %v2609_v5, %v2609_v5  ;;  %v2625_v7 = vrot.slane %v2609_v5, %v3453_v38  ;;  %v2632_v53 = vrot.slane %v2610_v60, %v3453_v38  ;;  %v2640_v27 = vcombine.high %v2618_v0, %v2618_v0 }
 0x316   :  { %vm2692_vm6 = vcmp.gt.f32.partialorder %v2618_v0, 0.0  ;;  %v2710_v32 = vmul.f32 0.1, %v2618_v0  ;;  %v2651_v28 = vcombine.high %v2650_v18, %v2650_v18  ;;  %v2658_v6 = vrot.slane %v2650_v18, %v3453_v38 }
 0x317   :  { %v2639_v17 = vrot.slane %v2611_v22, %v3453_v38  ;;  %v2641_v31 = vcombine.high %v2625_v7, %v2625_v7  ;;  %v2642_v3 = vcombine.high %v2632_v53, %v2632_v53  ;;  %vm2693_vm7 = vcmp.gt.f32.partialorder %v2632_v53, 0.0 }
 0x318   :  { %vm2694_vm9 = vcmp.gt.f32.partialorder %v2640_v27, 0.0  ;;  %vm2696_vm10 = vcmp.gt.f32.partialorder %v2625_v7, 0.0  ;;  %v2711_v55 = vmul.f32 0.1, %v2632_v53  ;;  %v2712_v57 = vmul.f32 0.1, %v2640_v27 }
 0x319   :  { %v2643_v12 = vcombine.high %v2639_v17, %v2639_v17  ;;  %vm2695_vm11 = vcmp.gt.f32.partialorder %v2642_v3, 0.0  ;;  %vm2697_vm12 = vcmp.gt.f32.partialorder %v2639_v17, 0.0  ;;  %vm2698_vm13 = vcmp.gt.f32.partialorder %v2641_v31, 0.0 }
 0x31a   :  { %v2713_v50 = vmul.f32 0.1, %v2642_v3  ;;  %v2714_v37 = vmul.f32 0.1, %v2625_v7  ;;  %v2715_v46 = vmul.f32 0.1, %v2639_v17  ;;  %v2728_v49 = vsel %vm2692_vm6, %v2618_v0, %v2710_v32 }
 0x31b   :  { %vm2699_vm14 = vcmp.gt.f32.partialorder %v2643_v12, 0.0  ;;  %v2716_v19 = vmul.f32 0.1, %v2641_v31  ;;  %v2717_v1 = vmul.f32 0.1, %v2643_v12  ;;  %v2730_v35 = vsel %vm2694_vm9, %v2640_v27, %v2712_v57 }
 0x31c   :  { %v2731_v44 = vsel %vm2695_vm11, %v2642_v3, %v2713_v50  ;;  %v2732_v61 = vsel %vm2696_vm10, %v2625_v7, %v2714_v37  ;;  %v2733_v40 = vsel %vm2697_vm12, %v2639_v17, %v2715_v46  ;;  %v2729_v41 = vsel %vm2693_vm7, %v2632_v53, %v2711_v55 }
 0x31d   :  { %v2734_v30 = vsel %vm2698_vm13, %v2641_v31, %v2716_v19  ;;  %v2735_v39 = vsel %vm2699_vm14, %v2643_v12, %v2717_v1  ;;  %v2739_v16 = vmax.f32 %v2730_v35, %v2731_v44  ;;  %v2741_v9 = vmax.f32 %v2732_v61, %v2733_v40 }
 0x31e   :  { %v2743_v52 = vmax.f32 %v2734_v30, %v2735_v39  ;;  %v2744_v51 = vmax.f32 %v2727_v21, %v2728_v49  ;;  %v2665_v36 = vrot.slane %v2651_v28, %v3453_v38  ;;  %vm2700_vm15 = vcmp.gt.f32.partialorder %v2658_v6, 0.0 }
 0x31f   :  { %v2755_v10 = vrot.slane %v2739_v16, %v4081_v26  ;;  %v2767_v63 = vrot.slane %v2741_v9, %v4081_v26  ;;  %v2718_v24 = vmul.f32 0.1, %v2658_v6  ;;  %v2801_v54 = vsel %vm2800_vm5, %v2798_v59, %v2775_v25 }
 0x320   :  { %v2779_v33 = vrot.slane %v2743_v52, %v4081_v26  ;;  %v2787_v23 = vrot.slane %v2744_v51, %v4081_v26  ;;  %vm2701_vm0 = vcmp.gt.f32.partialorder %v2665_v36, 0.0  ;;  %v2719_v42 = vmul.f32 0.1, %v2665_v36 }
 0x321   :  { %v2796_v56 = vsel %vm2794_vm1, %v2729_v41, %v2755_v10  ;;  %v2736_v20 = vsel %vm2700_vm15, %v2658_v6, %v2718_v24 }
 0x322   :  { %v2799_v29 = vsel %vm2797_vm4, %v2796_v56, %v2767_v63  ;;  %v2737_v38 = vsel %vm2701_vm0, %v2665_v36, %v2719_v42  ;;  %v2804_v2 = vsel %vm2803_vm8, %v2801_v54, %v2787_v23 }
 0x323   :  { %v2745_v45 = vmax.f32 %v2736_v20, %v2737_v38  ;;  %2807 = vst.msk [vmem:[%s4128_s5] sm:$0x1f] %vm2806_vm2, %v2804_v2  ;;  %v2802_v47 = vsel %vm2800_vm5, %v2799_v29, %v2779_v33 }
 0x325   :  { %v2791_v48 = vrot.slane %v2745_v45, %v4081_v26 }
 0x327   :  { %v2805_v34 = vsel %vm2803_vm8, %v2802_v47, %v2791_v48 }
 0x328   :  { %2808 = vst.msk [vmem:[%s4128_s5 + $0x8] sm:$0x1f] %vm2806_vm2, %v2805_v34 }

</bundles_post_ra>
